<compile_context>
chip_gen: v7x
topology: tpu7x:2x2x1
jax: 0.10.0
libtpu: 0.0.40
codegen_flags: <defaults>
</compile_context>

<pallas_src>
import functools

import jax
import jax.numpy as jnp
from jax.experimental import pallas as pl
from jax.experimental.pallas import tpu as pltpu


def _round_up(n, m):
    return (n + m - 1) // m * m


def _choose_batch_tiling(batch):
    """Return (padded_batch, batch_tile).

    Tile is a multiple of 16 (bf16 packing), capped at 256 (v6e MXU M rows;
    2x128 for v5e's 128-wide MXUs).  Batches above 256 split into several
    parallel grid steps (feeds both v7x TensorCores)."""
    b16 = _round_up(max(batch, 1), 16)
    if b16 <= 256:
        return b16, b16
    tile = 256
    return _round_up(batch, tile), tile


def _lstm_ae_kernel(x_ref, wih_e_ref, whh_e_ref, b_e_ref,
                    wih_d_ref, whh_d_ref, b_d_ref,
                    w_lin_ref, b_lin_ref, out_ref, *, seq_len):
    # x_ref / out_ref : (T*Btile, D) flat 2D block, rows time-major within the
    #                   batch tile (row t*Btile + b  <->  (t, b)).
    T = seq_len
    TB, D = x_ref.shape
    B = TB // T                       # batch tile (multiple of 16)
    H = whh_e_ref.shape[0]
    G = 4 * H                         # fused gate width (i|f|o|g); 128 for H=32

    # Weights resident in VMEM (bf16); biases f32.
    wih_e = wih_e_ref[...]
    whh_e = whh_e_ref[...]
    wih_d = wih_d_ref[...]
    whh_d = whh_d_ref[...]
    w_lin = w_lin_ref[...]
    b_e = b_e_ref[...]                # (1, G)
    b_d = b_d_ref[...]                # (1, G)
    b_lin = b_lin_ref[...]            # (1, D)

    def cell_update(gates, c):
        # Gate columns are (i | f | o | g): one sigmoid over a contiguous
        # (B, 3H) slice, one tanh over (B, H).
        sig = jax.nn.sigmoid(gates[:, :3 * H])
        i = sig[:, 0 * H:1 * H]
        f = sig[:, 1 * H:2 * H]
        o = sig[:, 2 * H:3 * H]
        g = jnp.tanh(gates[:, 3 * H:4 * H])
        c_new = f * c + i * g
        h_new = o * jnp.tanh(c_new)
        return h_new, c_new

    # ---- encoder: input projection (+ bias) hoisted out of the recurrence ----
    # One (T*B, D) @ (D, G) matmul; stays 2D (no tile-crossing reshapes).
    xp = jnp.dot(x_ref[...].astype(jnp.bfloat16), wih_e,
                 preferred_element_type=jnp.float32) + b_e      # (T*B, G)

    h = jnp.zeros((B, H), jnp.float32)
    c = jnp.zeros((B, H), jnp.float32)
    for t in range(T):                # static unroll (T small, compile-time)
        gates = xp[t * B:(t + 1) * B, :] + jnp.dot(
            h.astype(jnp.bfloat16), whh_e, preferred_element_type=jnp.float32)
        h, c = cell_update(gates, c)
    h_enc = h                                                   # (B, H)

    # ---- decoder: constant input h_enc -> projected (and biased) once ----
    dec_in = jnp.dot(h_enc.astype(jnp.bfloat16), wih_d,
                     preferred_element_type=jnp.float32) + b_d  # (B, G)

    h = jnp.zeros((B, H), jnp.float32)
    c = jnp.zeros((B, H), jnp.float32)
    hs = []
    for t in range(T):
        gates = dec_in + jnp.dot(h.astype(jnp.bfloat16), whh_d,
                                 preferred_element_type=jnp.float32)
        h, c = cell_update(gates, c)
        hs.append(h)

    # torch.flip fused: concat decoder states in reversed time order, then one
    # batched (T*B, H) @ (H, D) linear and a single contiguous slab store.
    hdec = jnp.concatenate(hs[::-1], axis=0)                    # (T*B, H)
    y = jnp.dot(hdec.astype(jnp.bfloat16), w_lin,
                preferred_element_type=jnp.float32) + b_lin     # (T*B, D)
    out_ref[...] = y


def init_params(key, input_dim, hidden_dim):
    """PyTorch-style U(-1/sqrt(H), 1/sqrt(H)) init.

    Fused-gate layout with columns ordered (i | f | o | g) — a free init-time
    permutation that lets the kernel apply sigmoid to one contiguous slice.
    Matmul weights stored bf16, biases f32."""
    ks = jax.random.split(key, 10)
    bound = 1.0 / float(hidden_dim) ** 0.5
    G = 4 * hidden_dim

    def u(k, shape):
        return jax.random.uniform(k, shape, jnp.float32, -bound, bound)

    wih_e = u(ks[0], (input_dim, G))
    whh_e = u(ks[1], (hidden_dim, G))
    b_e = u(ks[2], (1, G)) + u(ks[3], (1, G))       # bias_ih + bias_hh
    wih_d = u(ks[4], (hidden_dim, G))
    whh_d = u(ks[5], (hidden_dim, G))
    b_d = u(ks[6], (1, G)) + u(ks[7], (1, G))
    w_lin = u(ks[8], (hidden_dim, input_dim))
    b_lin = u(ks[9], (1, input_dim))

    bf16 = lambda w: w.astype(jnp.bfloat16)
    return (bf16(wih_e), bf16(whh_e), b_e,
            bf16(wih_d), bf16(whh_d), b_d,
            bf16(w_lin), b_lin)


def lstm_ae_forward(x, params):
    """x: (B, input_dim, seq_len) -> (B * input_dim, seq_len), like the torch module."""
    B, D, T = x.shape
    B_pad, B_tile = _choose_batch_tiling(B)
    n_tiles = B_pad // B_tile

    # Time-major + batch padded, then regrouped so that each grid step's block
    # is ONE contiguous HBM slab of shape (T*B_tile, D) with rows time-major
    # inside the tile (row = t*B_tile + b).
    x_tbd = jnp.transpose(x.astype(jnp.float32), (2, 0, 1))         # (T, B, D)
    x_tbd = jnp.pad(x_tbd, ((0, 0), (0, B_pad - B), (0, 0)))        # (T, B_pad, D)
    x_flat = (x_tbd.reshape(T, n_tiles, B_tile, D)
                   .transpose(1, 0, 2, 3)
                   .reshape(n_tiles * T * B_tile, D))               # (n*T*Bt, D)

    vmem = pltpu.MemorySpace.VMEM
    # Whole-array VMEM residents: constant index -> fetched once, no per-step DMA.
    w_spec = pl.BlockSpec(memory_space=vmem)
    blk = (T * B_tile, D)

    kernel = functools.partial(_lstm_ae_kernel, seq_len=T)
    out_flat = pl.pallas_call(
        kernel,
        out_shape=jax.ShapeDtypeStruct((n_tiles * T * B_tile, D), jnp.float32),
        grid_spec=pltpu.PrefetchScalarGridSpec(
            num_scalar_prefetch=0,
            grid=(n_tiles,),                       # parallel batch tiles
            in_specs=[pl.BlockSpec(blk, lambda i: (i, 0))] + [w_spec] * 8,
            out_specs=pl.BlockSpec(blk, lambda i: (i, 0)),
        ),
        compiler_params=pltpu.CompilerParams(
            dimension_semantics=("parallel",)),
    )(x_flat, *params)

    # Undo the tile-contiguous layout (wrapper glue), drop batch padding.
    out_tbd = (out_flat.reshape(n_tiles, T, B_tile, D)
                       .transpose(1, 0, 2, 3)
                       .reshape(T, B_pad, D)[:, :B, :])             # (T, B, D)
    # Equivalent of out.permute(0, 2, 1).reshape(-1, seq_len):
    return jnp.transpose(out_tbd, (1, 2, 0)).reshape(B * D, T)


if __name__ == "__main__":
    B, INPUT_DIM, HIDDEN_DIM, SEQ_LEN = 2, 4, 32, 8

    key = jax.random.PRNGKey(0)
    kx, kp = jax.random.split(key)
    x = jax.random.normal(kx, (B, INPUT_DIM, SEQ_LEN), jnp.float32)
    params = init_params(kp, INPUT_DIM, HIDDEN_DIM)

    out = jax.jit(lstm_ae_forward)(x, params)
    jax.block_until_ready(out)
    assert out.shape == (B * INPUT_DIM, SEQ_LEN), out.shape
    assert bool(jnp.all(jnp.isfinite(out)))
    print("KERNEL_OK")
</pallas_src>

<mosaic_0001>
module attributes {stable_mosaic.version = 11 : i64} {
  func.func @_lstm_ae_kernel(%arg0: i32, %arg1: memref<128x4xf32, #tpu.memory_space<vmem>>, %arg2: memref<4x128xbf16, #tpu.memory_space<vmem>>, %arg3: memref<32x128xbf16, #tpu.memory_space<vmem>>, %arg4: memref<1x128xf32, #tpu.memory_space<vmem>>, %arg5: memref<32x128xbf16, #tpu.memory_space<vmem>>, %arg6: memref<32x128xbf16, #tpu.memory_space<vmem>>, %arg7: memref<1x128xf32, #tpu.memory_space<vmem>>, %arg8: memref<32x4xbf16, #tpu.memory_space<vmem>>, %arg9: memref<1x4xf32, #tpu.memory_space<vmem>>, %arg10: memref<128x4xf32, #tpu.memory_space<vmem>>) attributes {dimension_semantics = [#tpu.dimension_semantics<parallel>], iteration_bounds = array<i64: 1>, scalar_prefetch = 0 : i64, scratch_operands = 0 : i64, tpu.core_type = #tpu.core_type<tc>, window_params = [{transform_indices = @transform_0, window_bounds = array<i64: 128, 4>}, {pipeline_mode = #tpu.pipeline_mode<synchronous>, transform_indices = @transform_1, window_bounds = array<i64: 4, 128>}, {pipeline_mode = #tpu.pipeline_mode<synchronous>, transform_indices = @transform_2, window_bounds = array<i64: 32, 128>}, {pipeline_mode = #tpu.pipeline_mode<synchronous>, transform_indices = @transform_3, window_bounds = array<i64: 1, 128>}, {pipeline_mode = #tpu.pipeline_mode<synchronous>, transform_indices = @transform_4, window_bounds = array<i64: 32, 128>}, {pipeline_mode = #tpu.pipeline_mode<synchronous>, transform_indices = @transform_5, window_bounds = array<i64: 32, 128>}, {pipeline_mode = #tpu.pipeline_mode<synchronous>, transform_indices = @transform_6, window_bounds = array<i64: 1, 128>}, {pipeline_mode = #tpu.pipeline_mode<synchronous>, transform_indices = @transform_7, window_bounds = array<i64: 32, 4>}, {pipeline_mode = #tpu.pipeline_mode<synchronous>, transform_indices = @transform_8, window_bounds = array<i64: 1, 4>}, {transform_indices = @transform_9, window_bounds = array<i64: 128, 4>}]} {
    %c0 = arith.constant 0 : index
    %c0_0 = arith.constant 0 : index
    %0 = vector.load %arg2[%c0, %c0_0] : memref<4x128xbf16, #tpu.memory_space<vmem>>, vector<4x128xbf16>
    %c0_1 = arith.constant 0 : index
    %c0_2 = arith.constant 0 : index
    %1 = vector.load %arg3[%c0_1, %c0_2] : memref<32x128xbf16, #tpu.memory_space<vmem>>, vector<32x128xbf16>
    %c0_3 = arith.constant 0 : index
    %c0_4 = arith.constant 0 : index
    %2 = vector.load %arg5[%c0_3, %c0_4] : memref<32x128xbf16, #tpu.memory_space<vmem>>, vector<32x128xbf16>
    %c0_5 = arith.constant 0 : index
    %c0_6 = arith.constant 0 : index
    %3 = vector.load %arg6[%c0_5, %c0_6] : memref<32x128xbf16, #tpu.memory_space<vmem>>, vector<32x128xbf16>
    %c0_7 = arith.constant 0 : index
    %c0_8 = arith.constant 0 : index
    %4 = vector.load %arg8[%c0_7, %c0_8] : memref<32x4xbf16, #tpu.memory_space<vmem>>, vector<32x4xbf16>
    %c0_9 = arith.constant 0 : index
    %c0_10 = arith.constant 0 : index
    %5 = vector.load %arg4[%c0_9, %c0_10] : memref<1x128xf32, #tpu.memory_space<vmem>>, vector<1x128xf32>
    %c0_11 = arith.constant 0 : index
    %c0_12 = arith.constant 0 : index
    %6 = vector.load %arg7[%c0_11, %c0_12] : memref<1x128xf32, #tpu.memory_space<vmem>>, vector<1x128xf32>
    %c0_13 = arith.constant 0 : index
    %c0_14 = arith.constant 0 : index
    %7 = vector.load %arg9[%c0_13, %c0_14] : memref<1x4xf32, #tpu.memory_space<vmem>>, vector<1x4xf32>
    %c0_15 = arith.constant 0 : index
    %c0_16 = arith.constant 0 : index
    %8 = vector.load %arg1[%c0_15, %c0_16] : memref<128x4xf32, #tpu.memory_space<vmem>>, vector<128x4xf32>
    %9 = arith.truncf %8 : vector<128x4xf32> to vector<128x4xbf16>
    %cst = arith.constant dense<0.000000e+00> : vector<128x128xf32>
    %10 = tpu.matmul %9, %0, %cst {dimension_numbers = #tpu.dot_dimension_numbers<[1], [0], [0], [1], [0, 0, 1, 1], [], []>} : vector<128x4xbf16>, vector<4x128xbf16>, vector<128x128xf32> -> vector<128x128xf32>
    %11 = vector.broadcast %5 : vector<1x128xf32> to vector<128x128xf32>
    %12 = arith.addf %10, %11 : vector<128x128xf32>
    %cst_17 = arith.constant 0.000000e+00 : f32
    %13 = vector.broadcast %cst_17 : f32 to vector<16x32xf32>
    %cst_18 = arith.constant 0.000000e+00 : f32
    %14 = vector.broadcast %cst_18 : f32 to vector<16x32xf32>
    %15 = vector.extract_strided_slice %12 {offsets = [0, 0], sizes = [16, 128], strides = [1, 1]} : vector<128x128xf32> to vector<16x128xf32>
    %16 = arith.truncf %13 : vector<16x32xf32> to vector<16x32xbf16>
    %cst_19 = arith.constant dense<0.000000e+00> : vector<16x128xf32>
    %17 = tpu.matmul %16, %1, %cst_19 {dimension_numbers = #tpu.dot_dimension_numbers<[1], [0], [0], [1], [0, 0, 1, 1], [], []>} : vector<16x32xbf16>, vector<32x128xbf16>, vector<16x128xf32> -> vector<16x128xf32>
    %18 = arith.addf %15, %17 : vector<16x128xf32>
    %19 = vector.extract_strided_slice %18 {offsets = [0, 0], sizes = [16, 96], strides = [1, 1]} : vector<16x128xf32> to vector<16x96xf32>
    %20 = arith.negf %19 : vector<16x96xf32>
    %21 = math.exp %20 : vector<16x96xf32>
    %cst_20 = arith.constant 1.000000e+00 : f32
    %22 = vector.broadcast %cst_20 : f32 to vector<16x96xf32>
    %23 = arith.addf %22, %21 : vector<16x96xf32>
    %24 = arith.divf %22, %23 : vector<16x96xf32>
    %25 = vector.extract_strided_slice %24 {offsets = [0, 0], sizes = [16, 32], strides = [1, 1]} : vector<16x96xf32> to vector<16x32xf32>
    %26 = vector.extract_strided_slice %24 {offsets = [0, 32], sizes = [16, 32], strides = [1, 1]} : vector<16x96xf32> to vector<16x32xf32>
    %27 = vector.extract_strided_slice %24 {offsets = [0, 64], sizes = [16, 32], strides = [1, 1]} : vector<16x96xf32> to vector<16x32xf32>
    %28 = vector.extract_strided_slice %18 {offsets = [0, 96], sizes = [16, 32], strides = [1, 1]} : vector<16x128xf32> to vector<16x32xf32>
    %29 = math.tanh %28 : vector<16x32xf32>
    %30 = arith.mulf %26, %14 : vector<16x32xf32>
    %31 = arith.mulf %25, %29 : vector<16x32xf32>
    %32 = arith.addf %30, %31 : vector<16x32xf32>
    %33 = math.tanh %32 : vector<16x32xf32>
    %34 = arith.mulf %27, %33 : vector<16x32xf32>
    %35 = vector.extract_strided_slice %12 {offsets = [16, 0], sizes = [16, 128], strides = [1, 1]} : vector<128x128xf32> to vector<16x128xf32>
    %36 = arith.truncf %34 : vector<16x32xf32> to vector<16x32xbf16>
    %cst_21 = arith.constant dense<0.000000e+00> : vector<16x128xf32>
    %37 = tpu.matmul %36, %1, %cst_21 {dimension_numbers = #tpu.dot_dimension_numbers<[1], [0], [0], [1], [0, 0, 1, 1], [], []>} : vector<16x32xbf16>, vector<32x128xbf16>, vector<16x128xf32> -> vector<16x128xf32>
    %38 = arith.addf %35, %37 : vector<16x128xf32>
    %39 = vector.extract_strided_slice %38 {offsets = [0, 0], sizes = [16, 96], strides = [1, 1]} : vector<16x128xf32> to vector<16x96xf32>
    %40 = arith.negf %39 : vector<16x96xf32>
    %41 = math.exp %40 : vector<16x96xf32>
    %cst_22 = arith.constant 1.000000e+00 : f32
    %42 = vector.broadcast %cst_22 : f32 to vector<16x96xf32>
    %43 = arith.addf %42, %41 : vector<16x96xf32>
    %44 = arith.divf %42, %43 : vector<16x96xf32>
    %45 = vector.extract_strided_slice %44 {offsets = [0, 0], sizes = [16, 32], strides = [1, 1]} : vector<16x96xf32> to vector<16x32xf32>
    %46 = vector.extract_strided_slice %44 {offsets = [0, 32], sizes = [16, 32], strides = [1, 1]} : vector<16x96xf32> to vector<16x32xf32>
    %47 = vector.extract_strided_slice %44 {offsets = [0, 64], sizes = [16, 32], strides = [1, 1]} : vector<16x96xf32> to vector<16x32xf32>
    %48 = vector.extract_strided_slice %38 {offsets = [0, 96], sizes = [16, 32], strides = [1, 1]} : vector<16x128xf32> to vector<16x32xf32>
    %49 = math.tanh %48 : vector<16x32xf32>
    %50 = arith.mulf %46, %32 : vector<16x32xf32>
    %51 = arith.mulf %45, %49 : vector<16x32xf32>
    %52 = arith.addf %50, %51 : vector<16x32xf32>
    %53 = math.tanh %52 : vector<16x32xf32>
    %54 = arith.mulf %47, %53 : vector<16x32xf32>
    %55 = vector.extract_strided_slice %12 {offsets = [32, 0], sizes = [16, 128], strides = [1, 1]} : vector<128x128xf32> to vector<16x128xf32>
    %56 = arith.truncf %54 : vector<16x32xf32> to vector<16x32xbf16>
    %cst_23 = arith.constant dense<0.000000e+00> : vector<16x128xf32>
    %57 = tpu.matmul %56, %1, %cst_23 {dimension_numbers = #tpu.dot_dimension_numbers<[1], [0], [0], [1], [0, 0, 1, 1], [], []>} : vector<16x32xbf16>, vector<32x128xbf16>, vector<16x128xf32> -> vector<16x128xf32>
    %58 = arith.addf %55, %57 : vector<16x128xf32>
    %59 = vector.extract_strided_slice %58 {offsets = [0, 0], sizes = [16, 96], strides = [1, 1]} : vector<16x128xf32> to vector<16x96xf32>
    %60 = arith.negf %59 : vector<16x96xf32>
    %61 = math.exp %60 : vector<16x96xf32>
    %cst_24 = arith.constant 1.000000e+00 : f32
    %62 = vector.broadcast %cst_24 : f32 to vector<16x96xf32>
    %63 = arith.addf %62, %61 : vector<16x96xf32>
    %64 = arith.divf %62, %63 : vector<16x96xf32>
    %65 = vector.extract_strided_slice %64 {offsets = [0, 0], sizes = [16, 32], strides = [1, 1]} : vector<16x96xf32> to vector<16x32xf32>
    %66 = vector.extract_strided_slice %64 {offsets = [0, 32], sizes = [16, 32], strides = [1, 1]} : vector<16x96xf32> to vector<16x32xf32>
    %67 = vector.extract_strided_slice %64 {offsets = [0, 64], sizes = [16, 32], strides = [1, 1]} : vector<16x96xf32> to vector<16x32xf32>
    %68 = vector.extract_strided_slice %58 {offsets = [0, 96], sizes = [16, 32], strides = [1, 1]} : vector<16x128xf32> to vector<16x32xf32>
    %69 = math.tanh %68 : vector<16x32xf32>
    %70 = arith.mulf %66, %52 : vector<16x32xf32>
    %71 = arith.mulf %65, %69 : vector<16x32xf32>
    %72 = arith.addf %70, %71 : vector<16x32xf32>
    %73 = math.tanh %72 : vector<16x32xf32>
    %74 = arith.mulf %67, %73 : vector<16x32xf32>
    %75 = vector.extract_strided_slice %12 {offsets = [48, 0], sizes = [16, 128], strides = [1, 1]} : vector<128x128xf32> to vector<16x128xf32>
    %76 = arith.truncf %74 : vector<16x32xf32> to vector<16x32xbf16>
    %cst_25 = arith.constant dense<0.000000e+00> : vector<16x128xf32>
    %77 = tpu.matmul %76, %1, %cst_25 {dimension_numbers = #tpu.dot_dimension_numbers<[1], [0], [0], [1], [0, 0, 1, 1], [], []>} : vector<16x32xbf16>, vector<32x128xbf16>, vector<16x128xf32> -> vector<16x128xf32>
    %78 = arith.addf %75, %77 : vector<16x128xf32>
    %79 = vector.extract_strided_slice %78 {offsets = [0, 0], sizes = [16, 96], strides = [1, 1]} : vector<16x128xf32> to vector<16x96xf32>
    %80 = arith.negf %79 : vector<16x96xf32>
    %81 = math.exp %80 : vector<16x96xf32>
    %cst_26 = arith.constant 1.000000e+00 : f32
    %82 = vector.broadcast %cst_26 : f32 to vector<16x96xf32>
    %83 = arith.addf %82, %81 : vector<16x96xf32>
    %84 = arith.divf %82, %83 : vector<16x96xf32>
    %85 = vector.extract_strided_slice %84 {offsets = [0, 0], sizes = [16, 32], strides = [1, 1]} : vector<16x96xf32> to vector<16x32xf32>
    %86 = vector.extract_strided_slice %84 {offsets = [0, 32], sizes = [16, 32], strides = [1, 1]} : vector<16x96xf32> to vector<16x32xf32>
    %87 = vector.extract_strided_slice %84 {offsets = [0, 64], sizes = [16, 32], strides = [1, 1]} : vector<16x96xf32> to vector<16x32xf32>
    %88 = vector.extract_strided_slice %78 {offsets = [0, 96], sizes = [16, 32], strides = [1, 1]} : vector<16x128xf32> to vector<16x32xf32>
    %89 = math.tanh %88 : vector<16x32xf32>
    %90 = arith.mulf %86, %72 : vector<16x32xf32>
    %91 = arith.mulf %85, %89 : vector<16x32xf32>
    %92 = arith.addf %90, %91 : vector<16x32xf32>
    %93 = math.tanh %92 : vector<16x32xf32>
    %94 = arith.mulf %87, %93 : vector<16x32xf32>
    %95 = vector.extract_strided_slice %12 {offsets = [64, 0], sizes = [16, 128], strides = [1, 1]} : vector<128x128xf32> to vector<16x128xf32>
    %96 = arith.truncf %94 : vector<16x32xf32> to vector<16x32xbf16>
    %cst_27 = arith.constant dense<0.000000e+00> : vector<16x128xf32>
    %97 = tpu.matmul %96, %1, %cst_27 {dimension_numbers = #tpu.dot_dimension_numbers<[1], [0], [0], [1], [0, 0, 1, 1], [], []>} : vector<16x32xbf16>, vector<32x128xbf16>, vector<16x128xf32> -> vector<16x128xf32>
    %98 = arith.addf %95, %97 : vector<16x128xf32>
    %99 = vector.extract_strided_slice %98 {offsets = [0, 0], sizes = [16, 96], strides = [1, 1]} : vector<16x128xf32> to vector<16x96xf32>
    %100 = arith.negf %99 : vector<16x96xf32>
    %101 = math.exp %100 : vector<16x96xf32>
    %cst_28 = arith.constant 1.000000e+00 : f32
    %102 = vector.broadcast %cst_28 : f32 to vector<16x96xf32>
    %103 = arith.addf %102, %101 : vector<16x96xf32>
    %104 = arith.divf %102, %103 : vector<16x96xf32>
    %105 = vector.extract_strided_slice %104 {offsets = [0, 0], sizes = [16, 32], strides = [1, 1]} : vector<16x96xf32> to vector<16x32xf32>
    %106 = vector.extract_strided_slice %104 {offsets = [0, 32], sizes = [16, 32], strides = [1, 1]} : vector<16x96xf32> to vector<16x32xf32>
    %107 = vector.extract_strided_slice %104 {offsets = [0, 64], sizes = [16, 32], strides = [1, 1]} : vector<16x96xf32> to vector<16x32xf32>
    %108 = vector.extract_strided_slice %98 {offsets = [0, 96], sizes = [16, 32], strides = [1, 1]} : vector<16x128xf32> to vector<16x32xf32>
    %109 = math.tanh %108 : vector<16x32xf32>
    %110 = arith.mulf %106, %92 : vector<16x32xf32>
    %111 = arith.mulf %105, %109 : vector<16x32xf32>
    %112 = arith.addf %110, %111 : vector<16x32xf32>
    %113 = math.tanh %112 : vector<16x32xf32>
    %114 = arith.mulf %107, %113 : vector<16x32xf32>
    %115 = vector.extract_strided_slice %12 {offsets = [80, 0], sizes = [16, 128], strides = [1, 1]} : vector<128x128xf32> to vector<16x128xf32>
    %116 = arith.truncf %114 : vector<16x32xf32> to vector<16x32xbf16>
    %cst_29 = arith.constant dense<0.000000e+00> : vector<16x128xf32>
    %117 = tpu.matmul %116, %1, %cst_29 {dimension_numbers = #tpu.dot_dimension_numbers<[1], [0], [0], [1], [0, 0, 1, 1], [], []>} : vector<16x32xbf16>, vector<32x128xbf16>, vector<16x128xf32> -> vector<16x128xf32>
    %118 = arith.addf %115, %117 : vector<16x128xf32>
    %119 = vector.extract_strided_slice %118 {offsets = [0, 0], sizes = [16, 96], strides = [1, 1]} : vector<16x128xf32> to vector<16x96xf32>
    %120 = arith.negf %119 : vector<16x96xf32>
    %121 = math.exp %120 : vector<16x96xf32>
    %cst_30 = arith.constant 1.000000e+00 : f32
    %122 = vector.broadcast %cst_30 : f32 to vector<16x96xf32>
    %123 = arith.addf %122, %121 : vector<16x96xf32>
    %124 = arith.divf %122, %123 : vector<16x96xf32>
    %125 = vector.extract_strided_slice %124 {offsets = [0, 0], sizes = [16, 32], strides = [1, 1]} : vector<16x96xf32> to vector<16x32xf32>
    %126 = vector.extract_strided_slice %124 {offsets = [0, 32], sizes = [16, 32], strides = [1, 1]} : vector<16x96xf32> to vector<16x32xf32>
    %127 = vector.extract_strided_slice %124 {offsets = [0, 64], sizes = [16, 32], strides = [1, 1]} : vector<16x96xf32> to vector<16x32xf32>
    %128 = vector.extract_strided_slice %118 {offsets = [0, 96], sizes = [16, 32], strides = [1, 1]} : vector<16x128xf32> to vector<16x32xf32>
    %129 = math.tanh %128 : vector<16x32xf32>
    %130 = arith.mulf %126, %112 : vector<16x32xf32>
    %131 = arith.mulf %125, %129 : vector<16x32xf32>
    %132 = arith.addf %130, %131 : vector<16x32xf32>
    %133 = math.tanh %132 : vector<16x32xf32>
    %134 = arith.mulf %127, %133 : vector<16x32xf32>
    %135 = vector.extract_strided_slice %12 {offsets = [96, 0], sizes = [16, 128], strides = [1, 1]} : vector<128x128xf32> to vector<16x128xf32>
    %136 = arith.truncf %134 : vector<16x32xf32> to vector<16x32xbf16>
    %cst_31 = arith.constant dense<0.000000e+00> : vector<16x128xf32>
    %137 = tpu.matmul %136, %1, %cst_31 {dimension_numbers = #tpu.dot_dimension_numbers<[1], [0], [0], [1], [0, 0, 1, 1], [], []>} : vector<16x32xbf16>, vector<32x128xbf16>, vector<16x128xf32> -> vector<16x128xf32>
    %138 = arith.addf %135, %137 : vector<16x128xf32>
    %139 = vector.extract_strided_slice %138 {offsets = [0, 0], sizes = [16, 96], strides = [1, 1]} : vector<16x128xf32> to vector<16x96xf32>
    %140 = arith.negf %139 : vector<16x96xf32>
    %141 = math.exp %140 : vector<16x96xf32>
    %cst_32 = arith.constant 1.000000e+00 : f32
    %142 = vector.broadcast %cst_32 : f32 to vector<16x96xf32>
    %143 = arith.addf %142, %141 : vector<16x96xf32>
    %144 = arith.divf %142, %143 : vector<16x96xf32>
    %145 = vector.extract_strided_slice %144 {offsets = [0, 0], sizes = [16, 32], strides = [1, 1]} : vector<16x96xf32> to vector<16x32xf32>
    %146 = vector.extract_strided_slice %144 {offsets = [0, 32], sizes = [16, 32], strides = [1, 1]} : vector<16x96xf32> to vector<16x32xf32>
    %147 = vector.extract_strided_slice %144 {offsets = [0, 64], sizes = [16, 32], strides = [1, 1]} : vector<16x96xf32> to vector<16x32xf32>
    %148 = vector.extract_strided_slice %138 {offsets = [0, 96], sizes = [16, 32], strides = [1, 1]} : vector<16x128xf32> to vector<16x32xf32>
    %149 = math.tanh %148 : vector<16x32xf32>
    %150 = arith.mulf %146, %132 : vector<16x32xf32>
    %151 = arith.mulf %145, %149 : vector<16x32xf32>
    %152 = arith.addf %150, %151 : vector<16x32xf32>
    %153 = math.tanh %152 : vector<16x32xf32>
    %154 = arith.mulf %147, %153 : vector<16x32xf32>
    %155 = vector.extract_strided_slice %12 {offsets = [112, 0], sizes = [16, 128], strides = [1, 1]} : vector<128x128xf32> to vector<16x128xf32>
    %156 = arith.truncf %154 : vector<16x32xf32> to vector<16x32xbf16>
    %cst_33 = arith.constant dense<0.000000e+00> : vector<16x128xf32>
    %157 = tpu.matmul %156, %1, %cst_33 {dimension_numbers = #tpu.dot_dimension_numbers<[1], [0], [0], [1], [0, 0, 1, 1], [], []>} : vector<16x32xbf16>, vector<32x128xbf16>, vector<16x128xf32> -> vector<16x128xf32>
    %158 = arith.addf %155, %157 : vector<16x128xf32>
    %159 = vector.extract_strided_slice %158 {offsets = [0, 0], sizes = [16, 96], strides = [1, 1]} : vector<16x128xf32> to vector<16x96xf32>
    %160 = arith.negf %159 : vector<16x96xf32>
    %161 = math.exp %160 : vector<16x96xf32>
    %cst_34 = arith.constant 1.000000e+00 : f32
    %162 = vector.broadcast %cst_34 : f32 to vector<16x96xf32>
    %163 = arith.addf %162, %161 : vector<16x96xf32>
    %164 = arith.divf %162, %163 : vector<16x96xf32>
    %165 = vector.extract_strided_slice %164 {offsets = [0, 0], sizes = [16, 32], strides = [1, 1]} : vector<16x96xf32> to vector<16x32xf32>
    %166 = vector.extract_strided_slice %164 {offsets = [0, 32], sizes = [16, 32], strides = [1, 1]} : vector<16x96xf32> to vector<16x32xf32>
    %167 = vector.extract_strided_slice %164 {offsets = [0, 64], sizes = [16, 32], strides = [1, 1]} : vector<16x96xf32> to vector<16x32xf32>
    %168 = vector.extract_strided_slice %158 {offsets = [0, 96], sizes = [16, 32], strides = [1, 1]} : vector<16x128xf32> to vector<16x32xf32>
    %169 = math.tanh %168 : vector<16x32xf32>
    %170 = arith.mulf %166, %152 : vector<16x32xf32>
    %171 = arith.mulf %165, %169 : vector<16x32xf32>
    %172 = arith.addf %170, %171 : vector<16x32xf32>
    %173 = math.tanh %172 : vector<16x32xf32>
    %174 = arith.mulf %167, %173 : vector<16x32xf32>
    %175 = arith.truncf %174 : vector<16x32xf32> to vector<16x32xbf16>
    %cst_35 = arith.constant dense<0.000000e+00> : vector<16x128xf32>
    %176 = tpu.matmul %175, %2, %cst_35 {dimension_numbers = #tpu.dot_dimension_numbers<[1], [0], [0], [1], [0, 0, 1, 1], [], []>} : vector<16x32xbf16>, vector<32x128xbf16>, vector<16x128xf32> -> vector<16x128xf32>
    %177 = vector.broadcast %6 : vector<1x128xf32> to vector<16x128xf32>
    %178 = arith.addf %176, %177 : vector<16x128xf32>
    %cst_36 = arith.constant 0.000000e+00 : f32
    %179 = vector.broadcast %cst_36 : f32 to vector<16x32xf32>
    %cst_37 = arith.constant 0.000000e+00 : f32
    %180 = vector.broadcast %cst_37 : f32 to vector<16x32xf32>
    %181 = arith.truncf %179 : vector<16x32xf32> to vector<16x32xbf16>
    %cst_38 = arith.constant dense<0.000000e+00> : vector<16x128xf32>
    %182 = tpu.matmul %181, %3, %cst_38 {dimension_numbers = #tpu.dot_dimension_numbers<[1], [0], [0], [1], [0, 0, 1, 1], [], []>} : vector<16x32xbf16>, vector<32x128xbf16>, vector<16x128xf32> -> vector<16x128xf32>
    %183 = arith.addf %178, %182 : vector<16x128xf32>
    %184 = vector.extract_strided_slice %183 {offsets = [0, 0], sizes = [16, 96], strides = [1, 1]} : vector<16x128xf32> to vector<16x96xf32>
    %185 = arith.negf %184 : vector<16x96xf32>
    %186 = math.exp %185 : vector<16x96xf32>
    %cst_39 = arith.constant 1.000000e+00 : f32
    %187 = vector.broadcast %cst_39 : f32 to vector<16x96xf32>
    %188 = arith.addf %187, %186 : vector<16x96xf32>
    %189 = arith.divf %187, %188 : vector<16x96xf32>
    %190 = vector.extract_strided_slice %189 {offsets = [0, 0], sizes = [16, 32], strides = [1, 1]} : vector<16x96xf32> to vector<16x32xf32>
    %191 = vector.extract_strided_slice %189 {offsets = [0, 32], sizes = [16, 32], strides = [1, 1]} : vector<16x96xf32> to vector<16x32xf32>
    %192 = vector.extract_strided_slice %189 {offsets = [0, 64], sizes = [16, 32], strides = [1, 1]} : vector<16x96xf32> to vector<16x32xf32>
    %193 = vector.extract_strided_slice %183 {offsets = [0, 96], sizes = [16, 32], strides = [1, 1]} : vector<16x128xf32> to vector<16x32xf32>
    %194 = math.tanh %193 : vector<16x32xf32>
    %195 = arith.mulf %191, %180 : vector<16x32xf32>
    %196 = arith.mulf %190, %194 : vector<16x32xf32>
    %197 = arith.addf %195, %196 : vector<16x32xf32>
    %198 = math.tanh %197 : vector<16x32xf32>
    %199 = arith.mulf %192, %198 : vector<16x32xf32>
    %200 = arith.truncf %199 : vector<16x32xf32> to vector<16x32xbf16>
    %cst_40 = arith.constant dense<0.000000e+00> : vector<16x128xf32>
    %201 = tpu.matmul %200, %3, %cst_40 {dimension_numbers = #tpu.dot_dimension_numbers<[1], [0], [0], [1], [0, 0, 1, 1], [], []>} : vector<16x32xbf16>, vector<32x128xbf16>, vector<16x128xf32> -> vector<16x128xf32>
    %202 = arith.addf %178, %201 : vector<16x128xf32>
    %203 = vector.extract_strided_slice %202 {offsets = [0, 0], sizes = [16, 96], strides = [1, 1]} : vector<16x128xf32> to vector<16x96xf32>
    %204 = arith.negf %203 : vector<16x96xf32>
    %205 = math.exp %204 : vector<16x96xf32>
    %cst_41 = arith.constant 1.000000e+00 : f32
    %206 = vector.broadcast %cst_41 : f32 to vector<16x96xf32>
    %207 = arith.addf %206, %205 : vector<16x96xf32>
    %208 = arith.divf %206, %207 : vector<16x96xf32>
    %209 = vector.extract_strided_slice %208 {offsets = [0, 0], sizes = [16, 32], strides = [1, 1]} : vector<16x96xf32> to vector<16x32xf32>
    %210 = vector.extract_strided_slice %208 {offsets = [0, 32], sizes = [16, 32], strides = [1, 1]} : vector<16x96xf32> to vector<16x32xf32>
    %211 = vector.extract_strided_slice %208 {offsets = [0, 64], sizes = [16, 32], strides = [1, 1]} : vector<16x96xf32> to vector<16x32xf32>
    %212 = vector.extract_strided_slice %202 {offsets = [0, 96], sizes = [16, 32], strides = [1, 1]} : vector<16x128xf32> to vector<16x32xf32>
    %213 = math.tanh %212 : vector<16x32xf32>
    %214 = arith.mulf %210, %197 : vector<16x32xf32>
    %215 = arith.mulf %209, %213 : vector<16x32xf32>
    %216 = arith.addf %214, %215 : vector<16x32xf32>
    %217 = math.tanh %216 : vector<16x32xf32>
    %218 = arith.mulf %211, %217 : vector<16x32xf32>
    %219 = arith.truncf %218 : vector<16x32xf32> to vector<16x32xbf16>
    %cst_42 = arith.constant dense<0.000000e+00> : vector<16x128xf32>
    %220 = tpu.matmul %219, %3, %cst_42 {dimension_numbers = #tpu.dot_dimension_numbers<[1], [0], [0], [1], [0, 0, 1, 1], [], []>} : vector<16x32xbf16>, vector<32x128xbf16>, vector<16x128xf32> -> vector<16x128xf32>
    %221 = arith.addf %178, %220 : vector<16x128xf32>
    %222 = vector.extract_strided_slice %221 {offsets = [0, 0], sizes = [16, 96], strides = [1, 1]} : vector<16x128xf32> to vector<16x96xf32>
    %223 = arith.negf %222 : vector<16x96xf32>
    %224 = math.exp %223 : vector<16x96xf32>
    %cst_43 = arith.constant 1.000000e+00 : f32
    %225 = vector.broadcast %cst_43 : f32 to vector<16x96xf32>
    %226 = arith.addf %225, %224 : vector<16x96xf32>
    %227 = arith.divf %225, %226 : vector<16x96xf32>
    %228 = vector.extract_strided_slice %227 {offsets = [0, 0], sizes = [16, 32], strides = [1, 1]} : vector<16x96xf32> to vector<16x32xf32>
    %229 = vector.extract_strided_slice %227 {offsets = [0, 32], sizes = [16, 32], strides = [1, 1]} : vector<16x96xf32> to vector<16x32xf32>
    %230 = vector.extract_strided_slice %227 {offsets = [0, 64], sizes = [16, 32], strides = [1, 1]} : vector<16x96xf32> to vector<16x32xf32>
    %231 = vector.extract_strided_slice %221 {offsets = [0, 96], sizes = [16, 32], strides = [1, 1]} : vector<16x128xf32> to vector<16x32xf32>
    %232 = math.tanh %231 : vector<16x32xf32>
    %233 = arith.mulf %229, %216 : vector<16x32xf32>
    %234 = arith.mulf %228, %232 : vector<16x32xf32>
    %235 = arith.addf %233, %234 : vector<16x32xf32>
    %236 = math.tanh %235 : vector<16x32xf32>
    %237 = arith.mulf %230, %236 : vector<16x32xf32>
    %238 = arith.truncf %237 : vector<16x32xf32> to vector<16x32xbf16>
    %cst_44 = arith.constant dense<0.000000e+00> : vector<16x128xf32>
    %239 = tpu.matmul %238, %3, %cst_44 {dimension_numbers = #tpu.dot_dimension_numbers<[1], [0], [0], [1], [0, 0, 1, 1], [], []>} : vector<16x32xbf16>, vector<32x128xbf16>, vector<16x128xf32> -> vector<16x128xf32>
    %240 = arith.addf %178, %239 : vector<16x128xf32>
    %241 = vector.extract_strided_slice %240 {offsets = [0, 0], sizes = [16, 96], strides = [1, 1]} : vector<16x128xf32> to vector<16x96xf32>
    %242 = arith.negf %241 : vector<16x96xf32>
    %243 = math.exp %242 : vector<16x96xf32>
    %cst_45 = arith.constant 1.000000e+00 : f32
    %244 = vector.broadcast %cst_45 : f32 to vector<16x96xf32>
    %245 = arith.addf %244, %243 : vector<16x96xf32>
    %246 = arith.divf %244, %245 : vector<16x96xf32>
    %247 = vector.extract_strided_slice %246 {offsets = [0, 0], sizes = [16, 32], strides = [1, 1]} : vector<16x96xf32> to vector<16x32xf32>
    %248 = vector.extract_strided_slice %246 {offsets = [0, 32], sizes = [16, 32], strides = [1, 1]} : vector<16x96xf32> to vector<16x32xf32>
    %249 = vector.extract_strided_slice %246 {offsets = [0, 64], sizes = [16, 32], strides = [1, 1]} : vector<16x96xf32> to vector<16x32xf32>
    %250 = vector.extract_strided_slice %240 {offsets = [0, 96], sizes = [16, 32], strides = [1, 1]} : vector<16x128xf32> to vector<16x32xf32>
    %251 = math.tanh %250 : vector<16x32xf32>
    %252 = arith.mulf %248, %235 : vector<16x32xf32>
    %253 = arith.mulf %247, %251 : vector<16x32xf32>
    %254 = arith.addf %252, %253 : vector<16x32xf32>
    %255 = math.tanh %254 : vector<16x32xf32>
    %256 = arith.mulf %249, %255 : vector<16x32xf32>
    %257 = arith.truncf %256 : vector<16x32xf32> to vector<16x32xbf16>
    %cst_46 = arith.constant dense<0.000000e+00> : vector<16x128xf32>
    %258 = tpu.matmul %257, %3, %cst_46 {dimension_numbers = #tpu.dot_dimension_numbers<[1], [0], [0], [1], [0, 0, 1, 1], [], []>} : vector<16x32xbf16>, vector<32x128xbf16>, vector<16x128xf32> -> vector<16x128xf32>
    %259 = arith.addf %178, %258 : vector<16x128xf32>
    %260 = vector.extract_strided_slice %259 {offsets = [0, 0], sizes = [16, 96], strides = [1, 1]} : vector<16x128xf32> to vector<16x96xf32>
    %261 = arith.negf %260 : vector<16x96xf32>
    %262 = math.exp %261 : vector<16x96xf32>
    %cst_47 = arith.constant 1.000000e+00 : f32
    %263 = vector.broadcast %cst_47 : f32 to vector<16x96xf32>
    %264 = arith.addf %263, %262 : vector<16x96xf32>
    %265 = arith.divf %263, %264 : vector<16x96xf32>
    %266 = vector.extract_strided_slice %265 {offsets = [0, 0], sizes = [16, 32], strides = [1, 1]} : vector<16x96xf32> to vector<16x32xf32>
    %267 = vector.extract_strided_slice %265 {offsets = [0, 32], sizes = [16, 32], strides = [1, 1]} : vector<16x96xf32> to vector<16x32xf32>
    %268 = vector.extract_strided_slice %265 {offsets = [0, 64], sizes = [16, 32], strides = [1, 1]} : vector<16x96xf32> to vector<16x32xf32>
    %269 = vector.extract_strided_slice %259 {offsets = [0, 96], sizes = [16, 32], strides = [1, 1]} : vector<16x128xf32> to vector<16x32xf32>
    %270 = math.tanh %269 : vector<16x32xf32>
    %271 = arith.mulf %267, %254 : vector<16x32xf32>
    %272 = arith.mulf %266, %270 : vector<16x32xf32>
    %273 = arith.addf %271, %272 : vector<16x32xf32>
    %274 = math.tanh %273 : vector<16x32xf32>
    %275 = arith.mulf %268, %274 : vector<16x32xf32>
    %276 = arith.truncf %275 : vector<16x32xf32> to vector<16x32xbf16>
    %cst_48 = arith.constant dense<0.000000e+00> : vector<16x128xf32>
    %277 = tpu.matmul %276, %3, %cst_48 {dimension_numbers = #tpu.dot_dimension_numbers<[1], [0], [0], [1], [0, 0, 1, 1], [], []>} : vector<16x32xbf16>, vector<32x128xbf16>, vector<16x128xf32> -> vector<16x128xf32>
    %278 = arith.addf %178, %277 : vector<16x128xf32>
    %279 = vector.extract_strided_slice %278 {offsets = [0, 0], sizes = [16, 96], strides = [1, 1]} : vector<16x128xf32> to vector<16x96xf32>
    %280 = arith.negf %279 : vector<16x96xf32>
    %281 = math.exp %280 : vector<16x96xf32>
    %cst_49 = arith.constant 1.000000e+00 : f32
    %282 = vector.broadcast %cst_49 : f32 to vector<16x96xf32>
    %283 = arith.addf %282, %281 : vector<16x96xf32>
    %284 = arith.divf %282, %283 : vector<16x96xf32>
    %285 = vector.extract_strided_slice %284 {offsets = [0, 0], sizes = [16, 32], strides = [1, 1]} : vector<16x96xf32> to vector<16x32xf32>
    %286 = vector.extract_strided_slice %284 {offsets = [0, 32], sizes = [16, 32], strides = [1, 1]} : vector<16x96xf32> to vector<16x32xf32>
    %287 = vector.extract_strided_slice %284 {offsets = [0, 64], sizes = [16, 32], strides = [1, 1]} : vector<16x96xf32> to vector<16x32xf32>
    %288 = vector.extract_strided_slice %278 {offsets = [0, 96], sizes = [16, 32], strides = [1, 1]} : vector<16x128xf32> to vector<16x32xf32>
    %289 = math.tanh %288 : vector<16x32xf32>
    %290 = arith.mulf %286, %273 : vector<16x32xf32>
    %291 = arith.mulf %285, %289 : vector<16x32xf32>
    %292 = arith.addf %290, %291 : vector<16x32xf32>
    %293 = math.tanh %292 : vector<16x32xf32>
    %294 = arith.mulf %287, %293 : vector<16x32xf32>
    %295 = arith.truncf %294 : vector<16x32xf32> to vector<16x32xbf16>
    %cst_50 = arith.constant dense<0.000000e+00> : vector<16x128xf32>
    %296 = tpu.matmul %295, %3, %cst_50 {dimension_numbers = #tpu.dot_dimension_numbers<[1], [0], [0], [1], [0, 0, 1, 1], [], []>} : vector<16x32xbf16>, vector<32x128xbf16>, vector<16x128xf32> -> vector<16x128xf32>
    %297 = arith.addf %178, %296 : vector<16x128xf32>
    %298 = vector.extract_strided_slice %297 {offsets = [0, 0], sizes = [16, 96], strides = [1, 1]} : vector<16x128xf32> to vector<16x96xf32>
    %299 = arith.negf %298 : vector<16x96xf32>
    %300 = math.exp %299 : vector<16x96xf32>
    %cst_51 = arith.constant 1.000000e+00 : f32
    %301 = vector.broadcast %cst_51 : f32 to vector<16x96xf32>
    %302 = arith.addf %301, %300 : vector<16x96xf32>
    %303 = arith.divf %301, %302 : vector<16x96xf32>
    %304 = vector.extract_strided_slice %303 {offsets = [0, 0], sizes = [16, 32], strides = [1, 1]} : vector<16x96xf32> to vector<16x32xf32>
    %305 = vector.extract_strided_slice %303 {offsets = [0, 32], sizes = [16, 32], strides = [1, 1]} : vector<16x96xf32> to vector<16x32xf32>
    %306 = vector.extract_strided_slice %303 {offsets = [0, 64], sizes = [16, 32], strides = [1, 1]} : vector<16x96xf32> to vector<16x32xf32>
    %307 = vector.extract_strided_slice %297 {offsets = [0, 96], sizes = [16, 32], strides = [1, 1]} : vector<16x128xf32> to vector<16x32xf32>
    %308 = math.tanh %307 : vector<16x32xf32>
    %309 = arith.mulf %305, %292 : vector<16x32xf32>
    %310 = arith.mulf %304, %308 : vector<16x32xf32>
    %311 = arith.addf %309, %310 : vector<16x32xf32>
    %312 = math.tanh %311 : vector<16x32xf32>
    %313 = arith.mulf %306, %312 : vector<16x32xf32>
    %314 = arith.truncf %313 : vector<16x32xf32> to vector<16x32xbf16>
    %cst_52 = arith.constant dense<0.000000e+00> : vector<16x128xf32>
    %315 = tpu.matmul %314, %3, %cst_52 {dimension_numbers = #tpu.dot_dimension_numbers<[1], [0], [0], [1], [0, 0, 1, 1], [], []>} : vector<16x32xbf16>, vector<32x128xbf16>, vector<16x128xf32> -> vector<16x128xf32>
    %316 = arith.addf %178, %315 : vector<16x128xf32>
    %317 = vector.extract_strided_slice %316 {offsets = [0, 0], sizes = [16, 96], strides = [1, 1]} : vector<16x128xf32> to vector<16x96xf32>
    %318 = arith.negf %317 : vector<16x96xf32>
    %319 = math.exp %318 : vector<16x96xf32>
    %cst_53 = arith.constant 1.000000e+00 : f32
    %320 = vector.broadcast %cst_53 : f32 to vector<16x96xf32>
    %321 = arith.addf %320, %319 : vector<16x96xf32>
    %322 = arith.divf %320, %321 : vector<16x96xf32>
    %323 = vector.extract_strided_slice %322 {offsets = [0, 0], sizes = [16, 32], strides = [1, 1]} : vector<16x96xf32> to vector<16x32xf32>
    %324 = vector.extract_strided_slice %322 {offsets = [0, 32], sizes = [16, 32], strides = [1, 1]} : vector<16x96xf32> to vector<16x32xf32>
    %325 = vector.extract_strided_slice %322 {offsets = [0, 64], sizes = [16, 32], strides = [1, 1]} : vector<16x96xf32> to vector<16x32xf32>
    %326 = vector.extract_strided_slice %316 {offsets = [0, 96], sizes = [16, 32], strides = [1, 1]} : vector<16x128xf32> to vector<16x32xf32>
    %327 = math.tanh %326 : vector<16x32xf32>
    %328 = arith.mulf %324, %311 : vector<16x32xf32>
    %329 = arith.mulf %323, %327 : vector<16x32xf32>
    %330 = arith.addf %328, %329 : vector<16x32xf32>
    %331 = math.tanh %330 : vector<16x32xf32>
    %332 = arith.mulf %325, %331 : vector<16x32xf32>
    %333 = tpu.concatenate %332, %313, %294, %275, %256, %237, %218, %199 in 0 : vector<16x32xf32>, vector<16x32xf32>, vector<16x32xf32>, vector<16x32xf32>, vector<16x32xf32>, vector<16x32xf32>, vector<16x32xf32>, vector<16x32xf32> -> vector<128x32xf32>
    %334 = arith.truncf %333 : vector<128x32xf32> to vector<128x32xbf16>
    %cst_54 = arith.constant dense<0.000000e+00> : vector<128x4xf32>
    %335 = tpu.matmul %334, %4, %cst_54 {dimension_numbers = #tpu.dot_dimension_numbers<[1], [0], [0], [1], [0, 0, 1, 1], [], []>} : vector<128x32xbf16>, vector<32x4xbf16>, vector<128x4xf32> -> vector<128x4xf32>
    %336 = vector.broadcast %7 : vector<1x4xf32> to vector<128x4xf32>
    %337 = arith.addf %335, %336 : vector<128x4xf32>
    %c0_55 = arith.constant 0 : index
    %c0_56 = arith.constant 0 : index
    %338 = vector.load %arg10[%c0_55, %c0_56] : memref<128x4xf32, #tpu.memory_space<vmem>>, vector<128x4xf32>
    tpu.vector_store %arg10[%c0_55, %c0_56], %337 {strides = array<i32>} : memref<128x4xf32, #tpu.memory_space<vmem>>, vector<128x4xf32>,
    return
  }
  func.func @transform_0(%arg0: i32) -> (i32, i32) {
    %c0_i32 = arith.constant 0 : i32
    %c0_i32_0 = arith.constant 0 : i32
    return %arg0, %c0_i32 : i32, i32
  }
  func.func @transform_1(%arg0: i32) -> (i32, i32) {
    %c0_i32 = arith.constant 0 : i32
    %c0_i32_0 = arith.constant 0 : i32
    %c0_i32_1 = arith.constant 0 : i32
    return %c0_i32, %c0_i32_0 : i32, i32
  }
  func.func @transform_2(%arg0: i32) -> (i32, i32) {
    %c0_i32 = arith.constant 0 : i32
    %c0_i32_0 = arith.constant 0 : i32
    %c0_i32_1 = arith.constant 0 : i32
    return %c0_i32, %c0_i32_0 : i32, i32
  }
  func.func @transform_3(%arg0: i32) -> (i32, i32) {
    %c0_i32 = arith.constant 0 : i32
    %c0_i32_0 = arith.constant 0 : i32
    %c0_i32_1 = arith.constant 0 : i32
    return %c0_i32, %c0_i32_0 : i32, i32
  }
  func.func @transform_4(%arg0: i32) -> (i32, i32) {
    %c0_i32 = arith.constant 0 : i32
    %c0_i32_0 = arith.constant 0 : i32
    %c0_i32_1 = arith.constant 0 : i32
    return %c0_i32, %c0_i32_0 : i32, i32
  }
  func.func @transform_5(%arg0: i32) -> (i32, i32) {
    %c0_i32 = arith.constant 0 : i32
    %c0_i32_0 = arith.constant 0 : i32
    %c0_i32_1 = arith.constant 0 : i32
    return %c0_i32, %c0_i32_0 : i32, i32
  }
  func.func @transform_6(%arg0: i32) -> (i32, i32) {
    %c0_i32 = arith.constant 0 : i32
    %c0_i32_0 = arith.constant 0 : i32
    %c0_i32_1 = arith.constant 0 : i32
    return %c0_i32, %c0_i32_0 : i32, i32
  }
  func.func @transform_7(%arg0: i32) -> (i32, i32) {
    %c0_i32 = arith.constant 0 : i32
    %c0_i32_0 = arith.constant 0 : i32
    %c0_i32_1 = arith.constant 0 : i32
    return %c0_i32, %c0_i32_0 : i32, i32
  }
  func.func @transform_8(%arg0: i32) -> (i32, i32) {
    %c0_i32 = arith.constant 0 : i32
    %c0_i32_0 = arith.constant 0 : i32
    %c0_i32_1 = arith.constant 0 : i32
    return %c0_i32, %c0_i32_0 : i32, i32
  }
  func.func @transform_9(%arg0: i32) -> (i32, i32) {
    %c0_i32 = arith.constant 0 : i32
    %c0_i32_0 = arith.constant 0 : i32
    return %arg0, %c0_i32 : i32, i32
  }
}

</mosaic_0001>

<bundles_post_ra>
// kernel: lstm_ae_forward.1
= control target key start
LH: loop header
LB: loop body
LE: loop exit
PB: predicated region body
PF: predicated region fallthrough
CT: control target
= control target key end

     0   :  { %vm108_vm0 = vcmask 1041408   ;;  %vm83_vm1 = vcmask 31744   ;;  %v2587_v3 = vmov 0.0   ;;  %vm2588_vm2 = vmmov 0   ;;  %s2591_s24 = smov 64   ;;  %s3129_s1 = inlined_call_operand.vmem [shape: bf16[4,128], index: 1, kind: input, shape index: {}]   ;;  %s3130_s0 = inlined_call_operand.vmem [shape: f32[128,4], index: 0, kind: input, shape index: {}]   ;;  %s3131_s2 = inlined_call_operand.vmem [shape: bf16[32,128], index: 2, kind: input, shape index: {}]   ;;  %s3132_s3 = inlined_call_operand.vmem [shape: f32[1,128], index: 3, kind: input, shape index: {}]   ;;  %s3133_s4 = inlined_call_operand.vmem [shape: bf16[32,128], index: 4, kind: input, shape index: {}]   ;;  %s3134_s5 = inlined_call_operand.vmem [shape: bf16[32,128], index: 5, kind: input, shape index: {}]   ;;  %s3135_s6 = inlined_call_operand.vmem [shape: f32[1,128], index: 6, kind: input, shape index: {}]   ;;  %s3136_s7 = inlined_call_operand.vmem [shape: bf16[32,4], index: 7, kind: input, shape index: {}]   ;;  %s3137_s8 = inlined_call_operand.vmem [shape: f32[1,4], index: 8, kind: input, shape index: {}]   ;;  %s3138_s9 = inlined_call_operand.vmem [shape: f32[128,4], index: 9, kind: output, shape index: {}]  }
   0x1   :  { %v33_v0 = vld [vmem:[%s3129_s1] sm:$0x3]  ;;  %v54_v2 = vld [vmem:[%s3130_s0 + $0x8] sm:$0xff]  ;;  %2177 = vmatprep.subr.bf16.mxu1 %v2587_v3  ;;  %2181 = vmatprep.mubr.msk.bf16.mxu1 %vm2588_vm2, %v2587_v3  ;;  %v55_v6 = vld [vmem:[%s3130_s0 + $0x10] sm:$0xff]  ;;  %v2589_v29 = vmov 0   ;;  %vm221_vm3 = vcmask 261120  }
   0x2   :  { %v53_v1 = vld [vmem:[%s3130_s0] sm:$0xff]  ;;  %2317 = vmatprep.subr.msk.bf16.mxu0 %vm108_vm0, %v33_v0  ;;  %v110_v4 = vsel %vm108_vm0, %v33_v0, 0  ;;  %v56_v7 = vld [vmem:[%s3130_s0 + $0x18] sm:$0xff]  ;;  %v58_v11 = vld [vmem:[%s3130_s0 + $0x28] sm:$0xff] }
   0x3   :  { %v69_v5 = vpack.c.bf16 %v54_v2, %v53_v1  ;;  %2144 = vmatpush3.bf16.msra.mxu0 %v110_v4  ;;  %v70_v8 = vpack.c.bf16 %v56_v7, %v55_v6  ;;  %v2663_v9 = vld [vmem:[%s3131_s2] sm:$0xff]   ;;  %v59_v13 = vld [vmem:[%s3130_s0 + $0x30] sm:$0xff]  ;;  %v60_v14 = vld [vmem:[%s3130_s0 + $0x38] sm:$0xff] }
   0x4   :  { %v57_v10 = vld [vmem:[%s3130_s0 + $0x20] sm:$0xff]  ;;  %2161 = vmatprep.subr.bf16.mxu0 %v2587_v3  ;;  %2178 = vmatpush3.bf16.msra.mxu1 %v2663_v9  ;;  %v2687_v15 = vld [vmem:[%s3131_s2 + $0x8] sm:$0xff]   ;;  %v72_v18 = vpack.c.bf16 %v60_v14, %v59_v13  ;;  %v63_v20 = vld [vmem:[%s3130_s0 + $0x50] sm:$0xff] }
   0x5   :  { %2145 = vmatprep.mubr.msk.bf16.mxu0 %vm83_vm1, %v69_v5  ;;  %v71_v12 = vpack.c.bf16 %v58_v11, %v57_v10  ;;  %2179 = vmatprep.subr.bf16.mxu1 %v2587_v3  ;;  %v61_v16 = vld [vmem:[%s3130_s0 + $0x40] sm:$0xff]  ;;  %v62_v17 = vld [vmem:[%s3130_s0 + $0x48] sm:$0xff]  ;;  %v64_v21 = vld [vmem:[%s3130_s0 + $0x58] sm:$0xff] }
   0x6   :  { %2146 = vmatmul.mubr.msk.bf16.vlgmr.msra.gmra.mrb[0].mxu0 %vm83_vm1, %v70_v8  ;;  %v73_v19 = vpack.c.bf16 %v62_v17, %v61_v16  ;;  %v65_v22 = vld [vmem:[%s3130_s0 + $0x60] sm:$0xff]  ;;  %v66_v23 = vld [vmem:[%s3130_s0 + $0x68] sm:$0xff]  ;;  %v74_v24 = vpack.c.bf16 %v64_v21, %v63_v20  ;;  %v67_v26 = vld [vmem:[%s3130_s0 + $0x70] sm:$0xff] }
   0x7   :  { %2162 = vmatpush3.bf16.msra.mxu0 %v2663_v9  ;;  %2149 = vmatprep.mubr.msk.bf16.mxu0 %vm83_vm1, %v71_v12  ;;  %v75_v25 = vpack.c.bf16 %v66_v23, %v65_v22  ;;  %v68_v27 = vld [vmem:[%s3130_s0 + $0x78] sm:$0xff]  ;;  %v1999_v30 = vld [vmem:[%s3132_s3] ss:$0 sm:$0xff]  ;;  %s2590_s3 = smov 32  }
   0x8   :  { %2163 = vmatprep.subr.bf16.mxu0 %v2587_v3  ;;  %2180 = vmatpush3.bf16.msra.mxu1 %v2687_v15  ;;  %v76_v28 = vpack.c.bf16 %v68_v27, %v67_v26 }
   0x9   :  { %2185 = vmatprep.subr.bf16.mxu1 %v2587_v3 }
   0xb   :  { %2164 = vmatpush3.bf16.msra.mxu0 %v2687_v15 }
   0xc   :  { %2169 = vmatprep.subr.bf16.mxu0 %v2587_v3 }
   0xe   :  { %2150 = vmatmul.mubr.msk.bf16.gmra.mrb[4].mxu0 %vm83_vm1, %v72_v18 }
   0xf   :  { %2153 = vmatprep.mubr.msk.bf16.mxu0 %vm83_vm1, %v73_v19 }
  0x16   :  { %2154 = vmatmul.mubr.msk.bf16.gmra.mrb[8].mxu0 %vm83_vm1, %v74_v24 }
  0x17   :  { %2157 = vmatprep.mubr.msk.bf16.mxu0 %vm83_vm1, %v75_v25 }
  0x1e   :  { %2158 = vmatmul.mubr.msk.bf16.gmra.mrb[12].mxu0 %vm83_vm1, %v76_v28 }
  0x1f   :  { %2165 = vmatprep.mubr.msk.bf16.mxu0 %vm2588_vm2, %v2587_v3 }
  0x26   :  { %2166 = vmatmul.mubr.bf16.vlgmr.msra.gmra.mrb[16].mxu0 %v2589_v29 }
  0x27   :  { %2170 = vmatpush3.bf16.msra.mxu0 %v2663_v9  ;;  %2173 = vmatprep.mubr.msk.bf16.mxu0 %vm2588_vm2, %v2587_v3 }
  0x28   :  { %2171 = vmatprep.subr.bf16.mxu0 %v2587_v3 }
  0x2b   :  { %2172 = vmatpush3.bf16.msra.mxu0 %v2687_v15 }
  0x2c   :  { %2193 = vmatprep.subr.bf16.mxu0 %v2587_v3 }
  0xd9   :  { %v2147_v31 = vpop.f32.mrb[0].mxu0 }
  0xda   :  { %v2735_v32 = vadd.f32 %v2147_v31, %v1999_v30  ;;  %v146_v33 = vpop.f32.mrb[1].mxu0 }
  0xdb   :  { %v2148_v34 = vpop.f32.mrb[2].mxu0  ;;  %v147_v61 = vadd.f32 %v1999_v30, %v146_v33 }
  0xdc   :  { %v2737_v35 = vadd.f32 %v2148_v34, %v1999_v30  ;;  %v149_v36 = vpop.f32.mrb[3].mxu0 }
  0xdd   :  { %v150_v63 = vadd.f32 %v1999_v30, %v149_v36 }
  0xe1   :  { %v2151_v37 = vpop.f32.mrb[4].mxu0 }
  0xe2   :  { %v2739_v38 = vadd.f32 %v2151_v37, %v1999_v30  ;;  %v162_v39 = vpop.f32.mrb[5].mxu0 }
  0xe3   :  { %v2741_v40 = vadd.f32 %v1999_v30, %v162_v39  ;;  %v2152_v41 = vpop.f32.mrb[6].mxu0 }
  0xe4   :  { %v2743_v42 = vadd.f32 %v2152_v41, %v1999_v30  ;;  %v165_v43 = vpop.f32.mrb[7].mxu0 }
  0xe5   :  { %v2745_v44 = vadd.f32 %v1999_v30, %v165_v43 }
  0xe9   :  { %v2155_v45 = vpop.f32.mrb[8].mxu0 }
  0xea   :  { %v2747_v46 = vadd.f32 %v2155_v45, %v1999_v30  ;;  %v178_v47 = vpop.f32.mrb[9].mxu0 }
  0xeb   :  { %v2749_v48 = vadd.f32 %v1999_v30, %v178_v47  ;;  %v2156_v49 = vpop.f32.mrb[10].mxu0 }
  0xec   :  { %v2751_v50 = vadd.f32 %v2156_v49, %v1999_v30  ;;  %v181_v51 = vpop.f32.mrb[11].mxu0 }
  0xed   :  { %v2753_v52 = vadd.f32 %v1999_v30, %v181_v51 }
  0xf1   :  { %v2159_v53 = vpop.f32.mrb[12].mxu0 }
  0xf2   :  { %v2755_v54 = vadd.f32 %v2159_v53, %v1999_v30  ;;  %v194_v55 = vpop.f32.mrb[13].mxu0 }
  0xf3   :  { %v2757_v56 = vadd.f32 %v1999_v30, %v194_v55  ;;  %v2160_v57 = vpop.f32.mrb[14].mxu0 }
  0xf4   :  { %v2759_v58 = vadd.f32 %v2160_v57, %v1999_v30  ;;  %v197_v59 = vpop.f32.mrb[15].mxu0 }
  0xf5   :  { %v2761_v60 = vadd.f32 %v1999_v30, %v197_v59 }
  0xf9   :  { %v259_v62 = vpop.f32.mrb[16].mxu0 }
  0xfa   :  { %v266_v0 = vadd.f32 %v259_v62, %v147_v61  ;;  %v2167_v1 = vpop.f32.mrb[17].mxu0 }
  0xfb   :  { %v262_v2 = vpop.f32.mrb[18].mxu0 }
  0xfc   :  { %2331 = vtanh.f32 %v266_v0  ;;  %v267_v4 = vadd.f32 %v262_v2, %v150_v63  ;;  %v2168_v5 = vpop.f32.mrb[19].mxu0  ;;  %v2010_v8 = vmul.f32 -1.442695, %v266_v0 }
  0xfe   :  { %2333 = vtanh.f32 %v267_v4  ;;  %v2011_v10 = vmul.f32 -1.442695, %v267_v4 }
  0xff   :  { %2335 = vpow2.f32 %v2010_v8 }
 0x100   :  { %2337 = vpow2.f32 %v2011_v10 }
 0x106   :  { %v2332_v6 = vpop.eup %2331 }
 0x107   :  { %286 = vrot.lane.b32.xlu0 %v2332_v6, %s2590_s3 }
 0x108   :  { %v2334_v7 = vpop.eup %2333 }
 0x109   :  { %v2336_v11 = vpop.eup %2335 }
 0x10a   :  { %v274_v12 = vadd.f32 1.0, %v2336_v11  ;;  %v2338_v13 = vpop.eup %2337 }
 0x10b   :  { %288 = vrot.lane.b32.xlu0 %v2334_v7, %s2590_s3  ;;  %v275_v14 = vadd.f32 1.0, %v2338_v13 }
 0x10c   :  { %2339 = vrcp.f32 %v274_v12 }
 0x10d   :  { %2341 = vrcp.f32 %v275_v14 }
 0x116   :  { %v2340_v16 = vpop.eup %2339 }
 0x117   :  { %v2342_v19 = vpop.eup %2341  ;;  %v282_v22 = vmul.f32 0.0, %v2340_v16 }
 0x118   :  { %v283_v25 = vmul.f32 0.0, %v2342_v19 }
 0x179   :  { %v287_v17 = vpop.permute.xlu0 %286 }
 0x17a   :  { %v292_v18 = vmul.f32 %v2340_v16, %v287_v17 }
 0x17c   :  { %296 = vrot.lane.b32.xlu1 %v292_v18, %s2590_s3 }
 0x17d   :  { %v289_v20 = vpop.permute.xlu0 %288 }
 0x17e   :  { %v293_v21 = vmul.f32 %v2342_v19, %v289_v20 }
 0x180   :  { %298 = vrot.lane.b32.xlu1 %v293_v21, %s2590_s3 }
 0x1ee   :  { %v297_v23 = vpop.permute.xlu1 %296 }
 0x1ef   :  { %v302_v24 = vadd.f32 %v297_v23, %v282_v22 }
 0x1f1   :  { %2343 = vtanh.f32 %v302_v24 }
 0x1f2   :  { %v299_v26 = vpop.permute.xlu1 %298 }
 0x1f3   :  { %v303_v27 = vadd.f32 %v299_v26, %v283_v25 }
 0x1f5   :  { %2345 = vtanh.f32 %v303_v27 }
 0x1fb   :  { %v2344_v28 = vpop.eup %2343 }
 0x1fc   :  { %308 = vrot.lane.b32.xlu0 %v2344_v28, %s2590_s3 }
 0x1ff   :  { %v2346_v30 = vpop.eup %2345 }
 0x200   :  { %310 = vrot.lane.b32.xlu1 %v2346_v30, %s2590_s3 }
 0x26e   :  { %v309_v31 = vpop.permute.xlu0 %308 }
 0x26f   :  { %v314_v34 = vmul.f32 %v2340_v16, %v309_v31 }
 0x272   :  { %v311_v33 = vpop.permute.xlu1 %310 }
 0x273   :  { %v315_v36 = vmul.f32 %v2342_v19, %v311_v33 }
 0x275   :  { %v316_v37 = vpack.c.bf16 %v315_v36, %v314_v34 }
 0x277   :  { %318 = vrot.lane.b32.xlu0 %v316_v37, %s2591_s24 }
 0x2e9   :  { %v319_v39 = vpop.permute.xlu0 %318 }
 0x2ea   :  { %2174 = vmatmul.mubr.msk.bf16.vlgmr.msra.gmra.mrb[20].mxu0 %vm221_vm3, %v319_v39 }
 0x2eb   :  { %2194 = vmatpush3.bf16.msra.mxu0 %v2663_v9  ;;  %2197 = vmatprep.mubr.msk.bf16.mxu0 %vm2588_vm2, %v2587_v3 }
 0x2ec   :  { %2195 = vmatprep.subr.bf16.mxu0 %v2587_v3 }
 0x2ef   :  { %2196 = vmatpush3.bf16.msra.mxu0 %v2687_v15 }
 0x2f0   :  { %2209 = vmatprep.subr.bf16.mxu0 %v2587_v3 }
 0x3bd   :  { %v357_v41 = vpop.f32.mrb[20].mxu0 }
 0x3be   :  { %v364_v43 = vadd.f32 %v357_v41, %v2735_v32  ;;  %v2175_v45 = vpop.f32.mrb[21].mxu0 }
 0x3bf   :  { %v360_v47 = vpop.f32.mrb[22].mxu0 }
 0x3c0   :  { %2347 = vtanh.f32 %v364_v43  ;;  %v365_v49 = vadd.f32 %v360_v47, %v2737_v35  ;;  %v2176_v51 = vpop.f32.mrb[23].mxu0  ;;  %v2013_v57 = vmul.f32 -1.442695, %v364_v43 }
 0x3c2   :  { %2349 = vtanh.f32 %v365_v49  ;;  %v2014_v59 = vmul.f32 -1.442695, %v365_v49 }
 0x3c3   :  { %2351 = vpow2.f32 %v2013_v57 }
 0x3c4   :  { %2353 = vpow2.f32 %v2014_v59 }
 0x3ca   :  { %v2348_v53 = vpop.eup %2347 }
 0x3cb   :  { %384 = vrot.lane.b32.xlu1 %v2348_v53, %s2590_s3 }
 0x3cc   :  { %v2350_v55 = vpop.eup %2349 }
 0x3cd   :  { %386 = vrot.lane.b32.xlu0 %v2350_v55, %s2590_s3  ;;  %v2352_v61 = vpop.eup %2351 }
 0x3ce   :  { %v2354_v62 = vpop.eup %2353  ;;  %v372_v32 = vadd.f32 1.0, %v2352_v61 }
 0x3cf   :  { %v373_v63 = vadd.f32 1.0, %v2354_v62 }
 0x3d0   :  { %2355 = vrcp.f32 %v372_v32 }
 0x3d1   :  { %2357 = vrcp.f32 %v373_v63 }
 0x3da   :  { %v2356_v0 = vpop.eup %2355 }
 0x3db   :  { %v2358_v2 = vpop.eup %2357  ;;  %v380_v6 = vmul.f32 %v2356_v0, %v302_v24 }
 0x3dc   :  { %v381_v10 = vmul.f32 %v2358_v2, %v303_v27 }
 0x43d   :  { %v385_v35 = vpop.permute.xlu1 %384 }
 0x43e   :  { %v390_v1 = vmul.f32 %v2356_v0, %v385_v35 }
 0x43f   :  { %v387_v4 = vpop.permute.xlu0 %386 }
 0x440   :  { %394 = vrot.lane.b32.xlu1 %v390_v1, %s2590_s3  ;;  %v391_v5 = vmul.f32 %v2358_v2, %v387_v4 }
 0x442   :  { %396 = vrot.lane.b32.xlu0 %v391_v5, %s2590_s3 }
 0x4b2   :  { %v395_v7 = vpop.permute.xlu1 %394 }
 0x4b3   :  { %v400_v8 = vadd.f32 %v395_v7, %v380_v6 }
 0x4b4   :  { %v397_v11 = vpop.permute.xlu0 %396 }
 0x4b5   :  { %2359 = vtanh.f32 %v400_v8  ;;  %v401_v12 = vadd.f32 %v397_v11, %v381_v10 }
 0x4b7   :  { %2361 = vtanh.f32 %v401_v12 }
 0x4bf   :  { %v2360_v13 = vpop.eup %2359 }
 0x4c0   :  { %406 = vrot.lane.b32.xlu1 %v2360_v13, %s2590_s3 }
 0x4c1   :  { %v2362_v14 = vpop.eup %2361 }
 0x4c2   :  { %408 = vrot.lane.b32.xlu0 %v2362_v14, %s2590_s3 }
 0x532   :  { %v407_v16 = vpop.permute.xlu1 %406 }
 0x533   :  { %v412_v18 = vmul.f32 %v2356_v0, %v407_v16 }
 0x534   :  { %v409_v17 = vpop.permute.xlu0 %408 }
 0x535   :  { %v413_v19 = vmul.f32 %v2358_v2, %v409_v17 }
 0x537   :  { %v414_v20 = vpack.c.bf16 %v413_v19, %v412_v18 }
 0x539   :  { %416 = vrot.lane.b32.xlu1 %v414_v20, %s2591_s24 }
 0x5ab   :  { %v417_v21 = vpop.permute.xlu1 %416 }
 0x5ac   :  { %2182 = vmatmul.mubr.msk.bf16.vlgmr.msra.gmra.mrb[0].mxu1 %vm221_vm3, %v417_v21 }
 0x5ad   :  { %2186 = vmatpush3.bf16.msra.mxu1 %v2663_v9  ;;  %2189 = vmatprep.mubr.msk.bf16.mxu1 %vm2588_vm2, %v2587_v3 }
 0x5ae   :  { %2187 = vmatprep.subr.bf16.mxu1 %v2587_v3 }
 0x5b1   :  { %2188 = vmatpush3.bf16.msra.mxu1 %v2687_v15 }
 0x5b2   :  { %2201 = vmatprep.subr.bf16.mxu1 %v2587_v3 }
 0x67f   :  { %v455_v22 = vpop.f32.mrb[0].mxu1 }
 0x680   :  { %v462_v23 = vadd.f32 %v455_v22, %v2741_v40  ;;  %v2183_v24 = vpop.f32.mrb[1].mxu1 }
 0x681   :  { %v458_v25 = vpop.f32.mrb[2].mxu1 }
 0x682   :  { %2363 = vtanh.f32 %v462_v23  ;;  %v463_v26 = vadd.f32 %v458_v25, %v2745_v44  ;;  %v2184_v27 = vpop.f32.mrb[3].mxu1  ;;  %v2016_v31 = vmul.f32 -1.442695, %v462_v23 }
 0x684   :  { %2365 = vtanh.f32 %v463_v26  ;;  %v2017_v33 = vmul.f32 -1.442695, %v463_v26 }
 0x685   :  { %2367 = vpow2.f32 %v2016_v31 }
 0x686   :  { %2369 = vpow2.f32 %v2017_v33 }
 0x68c   :  { %v2364_v28 = vpop.eup %2363 }
 0x68d   :  { %482 = vrot.lane.b32.xlu0 %v2364_v28, %s2590_s3 }
 0x68e   :  { %v2366_v30 = vpop.eup %2365 }
 0x68f   :  { %484 = vrot.lane.b32.xlu1 %v2366_v30, %s2590_s3  ;;  %v2368_v34 = vpop.eup %2367 }
 0x690   :  { %v2370_v36 = vpop.eup %2369  ;;  %v470_v40 = vadd.f32 1.0, %v2368_v34 }
 0x691   :  { %v471_v37 = vadd.f32 1.0, %v2370_v36 }
 0x692   :  { %2371 = vrcp.f32 %v470_v40 }
 0x693   :  { %2373 = vrcp.f32 %v471_v37 }
 0x69c   :  { %v2372_v39 = vpop.eup %2371 }
 0x69d   :  { %v2374_v43 = vpop.eup %2373  ;;  %v478_v49 = vmul.f32 %v2372_v39, %v400_v8 }
 0x69e   :  { %v479_v55 = vmul.f32 %v2374_v43, %v401_v12 }
 0x6ff   :  { %v483_v44 = vpop.permute.xlu0 %482 }
 0x700   :  { %v488_v41 = vmul.f32 %v2372_v39, %v483_v44 }
 0x701   :  { %v485_v45 = vpop.permute.xlu1 %484 }
 0x702   :  { %492 = vrot.lane.b32.xlu0 %v488_v41, %s2590_s3  ;;  %v489_v47 = vmul.f32 %v2374_v43, %v485_v45 }
 0x704   :  { %494 = vrot.lane.b32.xlu1 %v489_v47, %s2590_s3 }
 0x774   :  { %v493_v51 = vpop.permute.xlu0 %492 }
 0x775   :  { %v498_v53 = vadd.f32 %v493_v51, %v478_v49 }
 0x776   :  { %v495_v57 = vpop.permute.xlu1 %494 }
 0x777   :  { %2375 = vtanh.f32 %v498_v53  ;;  %v499_v59 = vadd.f32 %v495_v57, %v479_v55 }
 0x779   :  { %2377 = vtanh.f32 %v499_v59 }
 0x781   :  { %v2376_v61 = vpop.eup %2375 }
 0x782   :  { %504 = vrot.lane.b32.xlu0 %v2376_v61, %s2590_s3 }
 0x783   :  { %v2378_v62 = vpop.eup %2377 }
 0x784   :  { %506 = vrot.lane.b32.xlu1 %v2378_v62, %s2590_s3 }
 0x7f4   :  { %v505_v32 = vpop.permute.xlu0 %504 }
 0x7f5   :  { %v510_v0 = vmul.f32 %v2372_v39, %v505_v32 }
 0x7f6   :  { %v507_v63 = vpop.permute.xlu1 %506 }
 0x7f7   :  { %v511_v35 = vmul.f32 %v2374_v43, %v507_v63 }
 0x7f9   :  { %v512_v1 = vpack.c.bf16 %v511_v35, %v510_v0 }
 0x7fb   :  { %514 = vrot.lane.b32.xlu0 %v512_v1, %s2591_s24 }
 0x86d   :  { %v515_v2 = vpop.permute.xlu0 %514 }
 0x86e   :  { %2190 = vmatmul.mubr.msk.bf16.vlgmr.msra.gmra.mrb[4].mxu1 %vm221_vm3, %v515_v2 }
 0x86f   :  { %2202 = vmatpush3.bf16.msra.mxu1 %v2663_v9  ;;  %2205 = vmatprep.mubr.msk.bf16.mxu1 %vm2588_vm2, %v2587_v3 }
 0x870   :  { %2203 = vmatprep.subr.bf16.mxu1 %v2587_v3 }
 0x873   :  { %2204 = vmatpush3.bf16.msra.mxu1 %v2687_v15 }
 0x874   :  { %2217 = vmatprep.subr.bf16.mxu1 %v2587_v3 }
 0x941   :  { %v553_v4 = vpop.f32.mrb[4].mxu1 }
 0x942   :  { %v560_v5 = vadd.f32 %v553_v4, %v2739_v38  ;;  %v2191_v6 = vpop.f32.mrb[5].mxu1 }
 0x943   :  { %v556_v7 = vpop.f32.mrb[6].mxu1 }
 0x944   :  { %2379 = vtanh.f32 %v560_v5  ;;  %v561_v8 = vadd.f32 %v556_v7, %v2743_v42  ;;  %v2192_v10 = vpop.f32.mrb[7].mxu1  ;;  %v2019_v13 = vmul.f32 -1.442695, %v560_v5 }
 0x946   :  { %2381 = vtanh.f32 %v561_v8  ;;  %v2020_v14 = vmul.f32 -1.442695, %v561_v8 }
 0x947   :  { %2383 = vpow2.f32 %v2019_v13 }
 0x948   :  { %2385 = vpow2.f32 %v2020_v14 }
 0x94e   :  { %v2380_v11 = vpop.eup %2379 }
 0x94f   :  { %580 = vrot.lane.b32.xlu1 %v2380_v11, %s2590_s3 }
 0x950   :  { %v2382_v12 = vpop.eup %2381 }
 0x951   :  { %582 = vrot.lane.b32.xlu0 %v2382_v12, %s2590_s3  ;;  %v2384_v16 = vpop.eup %2383 }
 0x952   :  { %v2386_v17 = vpop.eup %2385  ;;  %v568_v38 = vadd.f32 1.0, %v2384_v16 }
 0x953   :  { %v569_v18 = vadd.f32 1.0, %v2386_v17 }
 0x954   :  { %2387 = vrcp.f32 %v568_v38 }
 0x955   :  { %2389 = vrcp.f32 %v569_v18 }
 0x95e   :  { %v2388_v19 = vpop.eup %2387 }
 0x95f   :  { %v2390_v21 = vpop.eup %2389  ;;  %v576_v24 = vmul.f32 %v2388_v19, %v498_v53 }
 0x960   :  { %v577_v27 = vmul.f32 %v2390_v21, %v499_v59 }
 0x9c1   :  { %v581_v42 = vpop.permute.xlu1 %580 }
 0x9c2   :  { %v586_v20 = vmul.f32 %v2388_v19, %v581_v42 }
 0x9c3   :  { %v583_v22 = vpop.permute.xlu0 %582 }
 0x9c4   :  { %590 = vrot.lane.b32.xlu1 %v586_v20, %s2590_s3  ;;  %v587_v23 = vmul.f32 %v2390_v21, %v583_v22 }
 0x9c6   :  { %592 = vrot.lane.b32.xlu0 %v587_v23, %s2590_s3 }
 0xa36   :  { %v591_v25 = vpop.permute.xlu1 %590 }
 0xa37   :  { %v596_v26 = vadd.f32 %v591_v25, %v576_v24 }
 0xa38   :  { %v593_v28 = vpop.permute.xlu0 %592 }
 0xa39   :  { %2391 = vtanh.f32 %v596_v26  ;;  %v597_v30 = vadd.f32 %v593_v28, %v577_v27 }
 0xa3b   :  { %2393 = vtanh.f32 %v597_v30 }
 0xa43   :  { %v2392_v31 = vpop.eup %2391 }
 0xa44   :  { %602 = vrot.lane.b32.xlu1 %v2392_v31, %s2590_s3 }
 0xa45   :  { %v2394_v33 = vpop.eup %2393 }
 0xa46   :  { %604 = vrot.lane.b32.xlu0 %v2394_v33, %s2590_s3 }
 0xab6   :  { %v603_v34 = vpop.permute.xlu1 %602 }
 0xab7   :  { %v608_v40 = vmul.f32 %v2388_v19, %v603_v34 }
 0xab8   :  { %v605_v36 = vpop.permute.xlu0 %604 }
 0xab9   :  { %v609_v37 = vmul.f32 %v2390_v21, %v605_v36 }
 0xabb   :  { %v610_v39 = vpack.c.bf16 %v609_v37, %v608_v40 }
 0xabd   :  { %612 = vrot.lane.b32.xlu1 %v610_v39, %s2591_s24 }
 0xb2f   :  { %v613_v44 = vpop.permute.xlu1 %612 }
 0xb30   :  { %2198 = vmatmul.mubr.msk.bf16.vlgmr.msra.gmra.mrb[24].mxu0 %vm221_vm3, %v613_v44 }
 0xb31   :  { %2210 = vmatpush3.bf16.msra.mxu0 %v2663_v9  ;;  %2213 = vmatprep.mubr.msk.bf16.mxu0 %vm2588_vm2, %v2587_v3 }
 0xb32   :  { %2211 = vmatprep.subr.bf16.mxu0 %v2587_v3 }
 0xb35   :  { %2212 = vmatpush3.bf16.msra.mxu0 %v2687_v15 }
 0xb36   :  { %2225 = vmatprep.subr.bf16.mxu0 %v2587_v3 }
 0xc03   :  { %v651_v41 = vpop.f32.mrb[24].mxu0 }
 0xc04   :  { %v658_v43 = vadd.f32 %v651_v41, %v2749_v48  ;;  %v2199_v45 = vpop.f32.mrb[25].mxu0 }
 0xc05   :  { %v654_v47 = vpop.f32.mrb[26].mxu0 }
 0xc06   :  { %2395 = vtanh.f32 %v658_v43  ;;  %v659_v49 = vadd.f32 %v654_v47, %v2753_v52  ;;  %v2200_v51 = vpop.f32.mrb[27].mxu0  ;;  %v2022_v57 = vmul.f32 -1.442695, %v658_v43 }
 0xc08   :  { %2397 = vtanh.f32 %v659_v49  ;;  %v2023_v59 = vmul.f32 -1.442695, %v659_v49 }
 0xc09   :  { %2399 = vpow2.f32 %v2022_v57 }
 0xc0a   :  { %2401 = vpow2.f32 %v2023_v59 }
 0xc10   :  { %v2396_v53 = vpop.eup %2395 }
 0xc11   :  { %678 = vrot.lane.b32.xlu0 %v2396_v53, %s2590_s3 }
 0xc12   :  { %v2398_v55 = vpop.eup %2397 }
 0xc13   :  { %680 = vrot.lane.b32.xlu1 %v2398_v55, %s2590_s3  ;;  %v2400_v61 = vpop.eup %2399 }
 0xc14   :  { %v2402_v62 = vpop.eup %2401  ;;  %v666_v48 = vadd.f32 1.0, %v2400_v61 }
 0xc15   :  { %v667_v32 = vadd.f32 1.0, %v2402_v62 }
 0xc16   :  { %2403 = vrcp.f32 %v666_v48 }
 0xc17   :  { %2405 = vrcp.f32 %v667_v32 }
 0xc20   :  { %v2404_v63 = vpop.eup %2403 }
 0xc21   :  { %v2406_v35 = vpop.eup %2405  ;;  %v674_v4 = vmul.f32 %v2404_v63, %v596_v26 }
 0xc22   :  { %v675_v7 = vmul.f32 %v2406_v35, %v597_v30 }
 0xc83   :  { %v679_v52 = vpop.permute.xlu0 %678 }
 0xc84   :  { %v684_v0 = vmul.f32 %v2404_v63, %v679_v52 }
 0xc85   :  { %v681_v1 = vpop.permute.xlu1 %680 }
 0xc86   :  { %688 = vrot.lane.b32.xlu0 %v684_v0, %s2590_s3  ;;  %v685_v2 = vmul.f32 %v2406_v35, %v681_v1 }
 0xc88   :  { %690 = vrot.lane.b32.xlu1 %v685_v2, %s2590_s3 }
 0xcf8   :  { %v689_v5 = vpop.permute.xlu0 %688 }
 0xcf9   :  { %v694_v6 = vadd.f32 %v689_v5, %v674_v4 }
 0xcfa   :  { %v691_v8 = vpop.permute.xlu1 %690 }
 0xcfb   :  { %2407 = vtanh.f32 %v694_v6  ;;  %v695_v10 = vadd.f32 %v691_v8, %v675_v7 }
 0xcfd   :  { %2409 = vtanh.f32 %v695_v10 }
 0xd05   :  { %v2408_v11 = vpop.eup %2407 }
 0xd06   :  { %700 = vrot.lane.b32.xlu0 %v2408_v11, %s2590_s3 }
 0xd07   :  { %v2410_v12 = vpop.eup %2409 }
 0xd08   :  { %702 = vrot.lane.b32.xlu1 %v2410_v12, %s2590_s3 }
 0xd78   :  { %v701_v13 = vpop.permute.xlu0 %700 }
 0xd79   :  { %v706_v16 = vmul.f32 %v2404_v63, %v701_v13 }
 0xd7a   :  { %v703_v14 = vpop.permute.xlu1 %702 }
 0xd7b   :  { %v707_v17 = vmul.f32 %v2406_v35, %v703_v14 }
 0xd7d   :  { %v708_v38 = vpack.c.bf16 %v707_v17, %v706_v16 }
 0xd7f   :  { %710 = vrot.lane.b32.xlu0 %v708_v38, %s2591_s24 }
 0xdf1   :  { %v711_v18 = vpop.permute.xlu0 %710 }
 0xdf2   :  { %2206 = vmatmul.mubr.msk.bf16.vlgmr.msra.gmra.mrb[8].mxu1 %vm221_vm3, %v711_v18 }
 0xdf3   :  { %2218 = vmatpush3.bf16.msra.mxu1 %v2663_v9  ;;  %2221 = vmatprep.mubr.msk.bf16.mxu1 %vm2588_vm2, %v2587_v3 }
 0xdf4   :  { %2219 = vmatprep.subr.bf16.mxu1 %v2587_v3 }
 0xdf7   :  { %2220 = vmatpush3.bf16.msra.mxu1 %v2687_v15 }
 0xdf8   :  { %2233 = vmatprep.subr.bf16.mxu1 %v2587_v3 }
 0xec5   :  { %v749_v19 = vpop.f32.mrb[8].mxu1 }
 0xec6   :  { %v756_v42 = vadd.f32 %v749_v19, %v2747_v46  ;;  %v2207_v20 = vpop.f32.mrb[9].mxu1 }
 0xec7   :  { %v752_v21 = vpop.f32.mrb[10].mxu1 }
 0xec8   :  { %2411 = vtanh.f32 %v756_v42  ;;  %v757_v22 = vadd.f32 %v752_v21, %v2751_v50  ;;  %v2208_v23 = vpop.f32.mrb[11].mxu1  ;;  %v2025_v25 = vmul.f32 -1.442695, %v756_v42 }
 0xeca   :  { %2413 = vtanh.f32 %v757_v22  ;;  %v2026_v15 = vmul.f32 -1.442695, %v757_v22 }
 0xecb   :  { %2415 = vpow2.f32 %v2025_v25 }
 0xecc   :  { %2417 = vpow2.f32 %v2026_v15 }
 0xed2   :  { %v2412_v9 = vpop.eup %2411 }
 0xed3   :  { %776 = vrot.lane.b32.xlu1 %v2412_v9, %s2590_s3 }
 0xed4   :  { %v2414_v24 = vpop.eup %2413 }
 0xed5   :  { %778 = vrot.lane.b32.xlu0 %v2414_v24, %s2590_s3  ;;  %v2416_v26 = vpop.eup %2415 }
 0xed6   :  { %v2418_v27 = vpop.eup %2417  ;;  %v764_v46 = vadd.f32 1.0, %v2416_v26 }
 0xed7   :  { %v765_v28 = vadd.f32 1.0, %v2418_v27 }
 0xed8   :  { %2419 = vrcp.f32 %v764_v46 }
 0xed9   :  { %2421 = vrcp.f32 %v765_v28 }
 0xee2   :  { %v2420_v30 = vpop.eup %2419 }
 0xee3   :  { %v2422_v33 = vpop.eup %2421  ;;  %v772_v40 = vmul.f32 %v2420_v30, %v694_v6 }
 0xee4   :  { %v773_v44 = vmul.f32 %v2422_v33, %v695_v10 }
 0xf45   :  { %v777_v50 = vpop.permute.xlu1 %776 }
 0xf46   :  { %v782_v31 = vmul.f32 %v2420_v30, %v777_v50 }
 0xf47   :  { %v779_v34 = vpop.permute.xlu0 %778 }
 0xf48   :  { %786 = vrot.lane.b32.xlu1 %v782_v31, %s2590_s3  ;;  %v783_v36 = vmul.f32 %v2422_v33, %v779_v34 }
 0xf4a   :  { %788 = vrot.lane.b32.xlu0 %v783_v36, %s2590_s3 }
 0xfba   :  { %v787_v37 = vpop.permute.xlu1 %786 }
 0xfbb   :  { %v792_v39 = vadd.f32 %v787_v37, %v772_v40 }
 0xfbc   :  { %v789_v41 = vpop.permute.xlu0 %788 }
 0xfbd   :  { %2423 = vtanh.f32 %v792_v39  ;;  %v793_v43 = vadd.f32 %v789_v41, %v773_v44 }
 0xfbf   :  { %2425 = vtanh.f32 %v793_v43 }
 0xfc7   :  { %v2424_v45 = vpop.eup %2423 }
 0xfc8   :  { %798 = vrot.lane.b32.xlu1 %v2424_v45, %s2590_s3 }
 0xfc9   :  { %v2426_v47 = vpop.eup %2425 }
 0xfca   :  { %800 = vrot.lane.b32.xlu0 %v2426_v47, %s2590_s3 }
0x103a   :  { %v799_v49 = vpop.permute.xlu1 %798 }
0x103b   :  { %v804_v53 = vmul.f32 %v2420_v30, %v799_v49 }
0x103c   :  { %v801_v51 = vpop.permute.xlu0 %800 }
0x103d   :  { %v805_v55 = vmul.f32 %v2422_v33, %v801_v51 }
0x103f   :  { %v806_v57 = vpack.c.bf16 %v805_v55, %v804_v53 }
0x1041   :  { %808 = vrot.lane.b32.xlu1 %v806_v57, %s2591_s24  ;;  %v2325_v57 = vld [vmem:[%s3133_s4] sm:$0xff]  }
0x10b3   :  { %v809_v59 = vpop.permute.xlu1 %808 }
0x10b4   :  { %2214 = vmatmul.mubr.msk.bf16.vlgmr.msra.gmra.mrb[28].mxu0 %vm221_vm3, %v809_v59  ;;  %v2877_v59 = vld [vmem:[%s3134_s5] sm:$0xff]  }
0x10b5   :  { %2229 = vmatprep.mubr.msk.bf16.mxu0 %vm2588_vm2, %v2587_v3  ;;  %2226 = vmatpush3.bf16.msra.mxu0 %v2325_v57 }
0x10b6   :  { %2227 = vmatprep.subr.bf16.mxu0 %v2587_v3 }
0x1187   :  { %v847_v61 = vpop.f32.mrb[28].mxu0 }
0x1188   :  { %v854_v62 = vadd.f32 %v847_v61, %v2757_v56  ;;  %v2215_v48 = vpop.f32.mrb[29].mxu0  ;;  %v2327_v61 = vld [vmem:[%s3133_s4 + $0x8] sm:$0xff]  }
0x1189   :  { %v850_v32 = vpop.f32.mrb[30].mxu0  ;;  %2228 = vmatpush3.bf16.msra.mxu0 %v2327_v61 }
0x118a   :  { %2427 = vtanh.f32 %v854_v62  ;;  %v855_v63 = vadd.f32 %v850_v32, %v2761_v60  ;;  %v2216_v52 = vpop.f32.mrb[31].mxu0  ;;  %v2028_v1 = vmul.f32 -1.442695, %v854_v62  ;;  %v2887_v62 = vld [vmem:[%s3134_s5 + $0x8] sm:$0xff]   ;;  %2241 = vmatprep.subr.bf16.mxu0 %v2587_v3 }
0x118c   :  { %2429 = vtanh.f32 %v855_v63  ;;  %v2029_v2 = vmul.f32 -1.442695, %v855_v63 }
0x118d   :  { %2431 = vpow2.f32 %v2028_v1 }
0x118e   :  { %2433 = vpow2.f32 %v2029_v2 }
0x1194   :  { %v2428_v0 = vpop.eup %2427 }
0x1195   :  { %874 = vrot.lane.b32.xlu0 %v2428_v0, %s2590_s3 }
0x1196   :  { %v2430_v35 = vpop.eup %2429 }
0x1197   :  { %876 = vrot.lane.b32.xlu1 %v2430_v35, %s2590_s3  ;;  %v2432_v4 = vpop.eup %2431 }
0x1198   :  { %v2434_v5 = vpop.eup %2433  ;;  %v862_v56 = vadd.f32 1.0, %v2432_v4 }
0x1199   :  { %v863_v6 = vadd.f32 1.0, %v2434_v5 }
0x119a   :  { %2435 = vrcp.f32 %v862_v56 }
0x119b   :  { %2437 = vrcp.f32 %v863_v6  ;;  %v2033_v6 = vld [vmem:[%s3135_s6] ss:$0 sm:$0xff] }
0x11a4   :  { %v2436_v7 = vpop.eup %2435 }
0x11a5   :  { %v2438_v10 = vpop.eup %2437  ;;  %v870_v13 = vmul.f32 %v2436_v7, %v792_v39 }
0x11a6   :  { %v871_v17 = vmul.f32 %v2438_v10, %v793_v43 }
0x1207   :  { %v875_v60 = vpop.permute.xlu0 %874 }
0x1208   :  { %v880_v8 = vmul.f32 %v2436_v7, %v875_v60 }
0x1209   :  { %v877_v11 = vpop.permute.xlu1 %876 }
0x120a   :  { %884 = vrot.lane.b32.xlu0 %v880_v8, %s2590_s3  ;;  %v881_v12 = vmul.f32 %v2438_v10, %v877_v11 }
0x120c   :  { %886 = vrot.lane.b32.xlu1 %v881_v12, %s2590_s3 }
0x127c   :  { %v885_v14 = vpop.permute.xlu0 %884 }
0x127d   :  { %v890_v16 = vadd.f32 %v885_v14, %v870_v13 }
0x127e   :  { %v887_v38 = vpop.permute.xlu1 %886 }
0x127f   :  { %2439 = vtanh.f32 %v890_v16  ;;  %v891_v18 = vadd.f32 %v887_v38, %v871_v17 }
0x1281   :  { %2441 = vtanh.f32 %v891_v18 }
0x1289   :  { %v2440_v19 = vpop.eup %2439 }
0x128a   :  { %896 = vrot.lane.b32.xlu0 %v2440_v19, %s2590_s3 }
0x128b   :  { %v2442_v42 = vpop.eup %2441 }
0x128c   :  { %898 = vrot.lane.b32.xlu1 %v2442_v42, %s2590_s3 }
0x12fc   :  { %v897_v20 = vpop.permute.xlu0 %896 }
0x12fd   :  { %v902_v22 = vmul.f32 %v2436_v7, %v897_v20 }
0x12fe   :  { %v899_v21 = vpop.permute.xlu1 %898 }
0x12ff   :  { %v903_v23 = vmul.f32 %v2438_v10, %v899_v21 }
0x1301   :  { %v904_v9 = vpack.c.bf16 %v903_v23, %v902_v22 }
0x1303   :  { %906 = vrot.lane.b32.xlu0 %v904_v9, %s2591_s24 }
0x1375   :  { %v907_v24 = vpop.permute.xlu0 %906 }
0x1376   :  { %2222 = vmatmul.mubr.msk.bf16.vlgmr.msra.gmra.mrb[12].mxu1 %vm221_vm3, %v907_v24 }
0x1377   :  { %2237 = vmatprep.mubr.msk.bf16.mxu1 %vm2588_vm2, %v2587_v3  ;;  %2234 = vmatpush3.bf16.msra.mxu1 %v2877_v59 }
0x1378   :  { %2235 = vmatprep.subr.bf16.mxu1 %v2587_v3 }
0x137b   :  { %2236 = vmatpush3.bf16.msra.mxu1 %v2887_v62 }
0x137c   :  { %2249 = vmatprep.subr.bf16.mxu1 %v2587_v3 }
0x137e   :  { %2238 = vmatmul.mubr.bf16.vlgmr.msra.gmra.mrb[16].mxu1 %v2589_v29 }
0x137f   :  { %2250 = vmatpush3.bf16.msra.mxu1 %v2877_v59  ;;  %2253 = vmatprep.mubr.msk.bf16.mxu1 %vm2588_vm2, %v2587_v3 }
0x1380   :  { %2251 = vmatprep.subr.bf16.mxu1 %v2587_v3 }
0x1383   :  { %2252 = vmatpush3.bf16.msra.mxu1 %v2887_v62 }
0x1384   :  { %2265 = vmatprep.subr.bf16.mxu1 %v2587_v3 }
0x1449   :  { %v945_v25 = vpop.f32.mrb[12].mxu1 }
0x144a   :  { %v952_v15 = vadd.f32 %v945_v25, %v2755_v54  ;;  %v2223_v26 = vpop.f32.mrb[13].mxu1 }
0x144b   :  { %v948_v27 = vpop.f32.mrb[14].mxu1 }
0x144c   :  { %2443 = vtanh.f32 %v952_v15  ;;  %v953_v46 = vadd.f32 %v948_v27, %v2759_v58  ;;  %v2224_v28 = vpop.f32.mrb[15].mxu1  ;;  %v2031_v31 = vmul.f32 -1.442695, %v952_v15 }
0x144e   :  { %2445 = vtanh.f32 %v953_v46  ;;  %v2032_v33 = vmul.f32 -1.442695, %v953_v46 }
0x144f   :  { %2447 = vpow2.f32 %v2031_v31 }
0x1450   :  { %2449 = vpow2.f32 %v2032_v33 }
0x1451   :  { %v1114_v29 = vpop.f32.mrb[16].mxu1 }
0x1452   :  { %v2239_v4 = vpop.f32.mrb[17].mxu1 }
0x1453   :  { %v1117_v5 = vpop.f32.mrb[18].mxu1 }
0x1454   :  { %v2240_v56 = vpop.f32.mrb[19].mxu1 }
0x1456   :  { %v2444_v30 = vpop.eup %2443 }
0x1457   :  { %972 = vrot.lane.b32.xlu1 %v2444_v30, %s2590_s3 }
0x1458   :  { %v2446_v50 = vpop.eup %2445 }
0x1459   :  { %974 = vrot.lane.b32.xlu0 %v2446_v50, %s2590_s3  ;;  %v2448_v34 = vpop.eup %2447 }
0x145a   :  { %v2450_v36 = vpop.eup %2449  ;;  %v960_v54 = vadd.f32 1.0, %v2448_v34 }
0x145b   :  { %v961_v40 = vadd.f32 1.0, %v2450_v36 }
0x145c   :  { %2451 = vrcp.f32 %v960_v54 }
0x145d   :  { %2453 = vrcp.f32 %v961_v40 }
0x1466   :  { %v2452_v37 = vpop.eup %2451 }
0x1467   :  { %v2454_v44 = vpop.eup %2453  ;;  %v968_v45 = vmul.f32 %v2452_v37, %v890_v16 }
0x1468   :  { %v969_v51 = vmul.f32 %v2454_v44, %v891_v18 }
0x14c9   :  { %v973_v58 = vpop.permute.xlu1 %972 }
0x14ca   :  { %v978_v39 = vmul.f32 %v2452_v37, %v973_v58 }
0x14cb   :  { %v975_v41 = vpop.permute.xlu0 %974 }
0x14cc   :  { %982 = vrot.lane.b32.xlu1 %v978_v39, %s2590_s3  ;;  %v979_v43 = vmul.f32 %v2454_v44, %v975_v41 }
0x14ce   :  { %984 = vrot.lane.b32.xlu0 %v979_v43, %s2590_s3 }
0x153e   :  { %v983_v47 = vpop.permute.xlu1 %982 }
0x153f   :  { %v988_v49 = vadd.f32 %v983_v47, %v968_v45 }
0x1540   :  { %v985_v53 = vpop.permute.xlu0 %984 }
0x1541   :  { %2455 = vtanh.f32 %v988_v49  ;;  %v989_v55 = vadd.f32 %v985_v53, %v969_v51 }
0x1543   :  { %2457 = vtanh.f32 %v989_v55 }
0x154b   :  { %v2456_v48 = vpop.eup %2455 }
0x154c   :  { %994 = vrot.lane.b32.xlu1 %v2456_v48, %s2590_s3 }
0x154d   :  { %v2458_v32 = vpop.eup %2457 }
0x154e   :  { %996 = vrot.lane.b32.xlu0 %v2458_v32, %s2590_s3 }
0x15be   :  { %v995_v63 = vpop.permute.xlu1 %994 }
0x15bf   :  { %v1000_v0 = vmul.f32 %v2452_v37, %v995_v63 }
0x15c0   :  { %v997_v52 = vpop.permute.xlu0 %996 }
0x15c1   :  { %v1001_v35 = vmul.f32 %v2454_v44, %v997_v52 }
0x15c3   :  { %v1002_v1 = vpack.c.bf16 %v1001_v35, %v1000_v0 }
0x15c5   :  { %1010 = vrot.lane.b32.xlu1 %v1002_v1, %s2591_s24 }
0x1637   :  { %v1011_v2 = vpop.permute.xlu1 %1010 }
0x1638   :  { %2230 = vmatmul.mubr.msk.bf16.vlgmr.msra.gmra.mrb[32].mxu0 %vm221_vm3, %v1011_v2 }
0x1639   :  { %2242 = vmatpush3.bf16.msra.mxu0 %v2877_v59  ;;  %2245 = vmatprep.mubr.msk.bf16.mxu0 %vm2588_vm2, %v2587_v3 }
0x163a   :  { %2243 = vmatprep.subr.bf16.mxu0 %v2587_v3 }
0x163d   :  { %2244 = vmatpush3.bf16.msra.mxu0 %v2887_v62 }
0x163e   :  { %2257 = vmatprep.subr.bf16.mxu0 %v2587_v3 }
0x170b   :  { %v1061_v7 = vpop.f32.mrb[32].mxu0 }
0x170c   :  { %v2913_v60 = vadd.f32 %v2033_v6, %v1061_v7  ;;  %v2231_v8 = vpop.f32.mrb[33].mxu0 }
0x170d   :  { %v1064_v10 = vpop.f32.mrb[34].mxu0 }
0x170e   :  { %v1121_v11 = vadd.f32 %v1114_v29, %v2913_v60  ;;  %v2916_v12 = vadd.f32 %v2033_v6, %v1064_v10  ;;  %v2232_v13 = vpop.f32.mrb[35].mxu0 }
0x1710   :  { %2459 = vtanh.f32 %v1121_v11  ;;  %v1122_v14 = vadd.f32 %v1117_v5, %v2916_v12  ;;  %v2039_v38 = vmul.f32 -1.442695, %v1121_v11 }
0x1712   :  { %2461 = vtanh.f32 %v1122_v14  ;;  %v2040_v18 = vmul.f32 -1.442695, %v1122_v14 }
0x1713   :  { %2463 = vpow2.f32 %v2039_v38 }
0x1714   :  { %2465 = vpow2.f32 %v2040_v18 }
0x171a   :  { %v2460_v16 = vpop.eup %2459 }
0x171b   :  { %1141 = vrot.lane.b32.xlu0 %v2460_v16, %s2590_s3 }
0x171c   :  { %v2462_v17 = vpop.eup %2461 }
0x171d   :  { %1143 = vrot.lane.b32.xlu1 %v2462_v17, %s2590_s3  ;;  %v2464_v19 = vpop.eup %2463 }
0x171e   :  { %v2466_v42 = vpop.eup %2465  ;;  %v1129_v20 = vadd.f32 1.0, %v2464_v19 }
0x171f   :  { %v1130_v21 = vadd.f32 1.0, %v2466_v42 }
0x1720   :  { %2467 = vrcp.f32 %v1129_v20 }
0x1721   :  { %2469 = vrcp.f32 %v1130_v21 }
0x172a   :  { %v2468_v22 = vpop.eup %2467 }
0x172b   :  { %v2470_v24 = vpop.eup %2469  ;;  %v1137_v26 = vmul.f32 0.0, %v2468_v22 }
0x172c   :  { %v1138_v28 = vmul.f32 0.0, %v2470_v24 }
0x178d   :  { %v1142_v23 = vpop.permute.xlu0 %1141 }
0x178e   :  { %v1147_v9 = vmul.f32 %v2468_v22, %v1142_v23 }
0x178f   :  { %v1144_v25 = vpop.permute.xlu1 %1143 }
0x1790   :  { %1151 = vrot.lane.b32.xlu0 %v1147_v9, %s2590_s3  ;;  %v1148_v15 = vmul.f32 %v2470_v24, %v1144_v25 }
0x1792   :  { %1153 = vrot.lane.b32.xlu1 %v1148_v15, %s2590_s3 }
0x1802   :  { %v1152_v27 = vpop.permute.xlu0 %1151 }
0x1803   :  { %v1157_v46 = vadd.f32 %v1152_v27, %v1137_v26 }
0x1804   :  { %v1154_v30 = vpop.permute.xlu1 %1153 }
0x1805   :  { %2471 = vtanh.f32 %v1157_v46  ;;  %v1158_v50 = vadd.f32 %v1154_v30, %v1138_v28 }
0x1807   :  { %2473 = vtanh.f32 %v1158_v50 }
0x180f   :  { %v2472_v31 = vpop.eup %2471 }
0x1810   :  { %1163 = vrot.lane.b32.xlu0 %v2472_v31, %s2590_s3 }
0x1811   :  { %v2474_v33 = vpop.eup %2473 }
0x1812   :  { %1165 = vrot.lane.b32.xlu1 %v2474_v33, %s2590_s3 }
0x1882   :  { %v1164_v34 = vpop.permute.xlu0 %1163 }
0x1883   :  { %v1169_v54 = vmul.f32 %v2468_v22, %v1164_v34 }
0x1884   :  { %v1166_v36 = vpop.permute.xlu1 %1165 }
0x1885   :  { %v1170_v40 = vmul.f32 %v2470_v24, %v1166_v36 }
0x1887   :  { %v1171_v37 = vpack.c.bf16 %v1170_v40, %v1169_v54 }
0x1889   :  { %1173 = vrot.lane.b32.xlu0 %v1171_v37, %s2591_s24 }
0x18fb   :  { %v2926_v58 = vpop.permute.xlu0 %1173 }
0x18fc   :  { %2246 = vmatmul.mubr.msk.bf16.vlgmr.msra.gmra.mrb[36].mxu0 %vm221_vm3, %v2926_v58 }
0x18fd   :  { %2258 = vmatpush3.bf16.msra.mxu0 %v2877_v59  ;;  %2261 = vmatprep.mubr.msk.bf16.mxu0 %vm2588_vm2, %v2587_v3 }
0x18fe   :  { %2259 = vmatprep.subr.bf16.mxu0 %v2587_v3 }
0x1901   :  { %2260 = vmatpush3.bf16.msra.mxu0 %v2887_v62 }
0x1902   :  { %2273 = vmatprep.subr.bf16.mxu0 %v2587_v3 }
0x19cf   :  { %v1212_v39 = vpop.f32.mrb[36].mxu0 }
0x19d0   :  { %v1219_v44 = vadd.f32 %v1212_v39, %v2913_v60  ;;  %v2247_v41 = vpop.f32.mrb[37].mxu0 }
0x19d1   :  { %v1215_v43 = vpop.f32.mrb[38].mxu0 }
0x19d2   :  { %2475 = vtanh.f32 %v1219_v44  ;;  %v1220_v45 = vadd.f32 %v1215_v43, %v2916_v12  ;;  %v2248_v47 = vpop.f32.mrb[39].mxu0  ;;  %v2042_v53 = vmul.f32 -1.442695, %v1219_v44 }
0x19d4   :  { %2477 = vtanh.f32 %v1220_v45  ;;  %v2043_v55 = vmul.f32 -1.442695, %v1220_v45 }
0x19d5   :  { %2479 = vpow2.f32 %v2042_v53 }
0x19d6   :  { %2481 = vpow2.f32 %v2043_v55 }
0x19dc   :  { %v2476_v49 = vpop.eup %2475 }
0x19dd   :  { %1239 = vrot.lane.b32.xlu1 %v2476_v49, %s2590_s3 }
0x19de   :  { %v2478_v51 = vpop.eup %2477 }
0x19df   :  { %1241 = vrot.lane.b32.xlu0 %v2478_v51, %s2590_s3  ;;  %v2480_v57 = vpop.eup %2479 }
0x19e0   :  { %v2482_v61 = vpop.eup %2481  ;;  %v1227_v48 = vadd.f32 1.0, %v2480_v57 }
0x19e1   :  { %v1228_v32 = vadd.f32 1.0, %v2482_v61 }
0x19e2   :  { %2483 = vrcp.f32 %v1227_v48 }
0x19e3   :  { %2485 = vrcp.f32 %v1228_v32 }
0x19ec   :  { %v2484_v63 = vpop.eup %2483 }
0x19ed   :  { %v2486_v35 = vpop.eup %2485  ;;  %v1235_v29 = vmul.f32 %v2484_v63, %v1157_v46 }
0x19ee   :  { %v1236_v56 = vmul.f32 %v2486_v35, %v1158_v50 }
0x1a4f   :  { %v1240_v52 = vpop.permute.xlu1 %1239 }
0x1a50   :  { %v1245_v0 = vmul.f32 %v2484_v63, %v1240_v52 }
0x1a51   :  { %v1242_v1 = vpop.permute.xlu0 %1241 }
0x1a52   :  { %1249 = vrot.lane.b32.xlu1 %v1245_v0, %s2590_s3  ;;  %v1246_v2 = vmul.f32 %v2486_v35, %v1242_v1 }
0x1a54   :  { %1251 = vrot.lane.b32.xlu0 %v1246_v2, %s2590_s3 }
0x1ac4   :  { %v1250_v4 = vpop.permute.xlu1 %1249 }
0x1ac5   :  { %v1255_v5 = vadd.f32 %v1250_v4, %v1235_v29 }
0x1ac6   :  { %v1252_v6 = vpop.permute.xlu0 %1251 }
0x1ac7   :  { %2487 = vtanh.f32 %v1255_v5  ;;  %v1256_v7 = vadd.f32 %v1252_v6, %v1236_v56 }
0x1ac9   :  { %2489 = vtanh.f32 %v1256_v7 }
0x1ad1   :  { %v2488_v8 = vpop.eup %2487 }
0x1ad2   :  { %1261 = vrot.lane.b32.xlu1 %v2488_v8, %s2590_s3 }
0x1ad3   :  { %v2490_v10 = vpop.eup %2489 }
0x1ad4   :  { %1263 = vrot.lane.b32.xlu0 %v2490_v10, %s2590_s3 }
0x1b44   :  { %v1262_v11 = vpop.permute.xlu1 %1261 }
0x1b45   :  { %v1267_v14 = vmul.f32 %v2484_v63, %v1262_v11 }
0x1b46   :  { %v1264_v13 = vpop.permute.xlu0 %1263 }
0x1b47   :  { %v1268_v16 = vmul.f32 %v2486_v35, %v1264_v13 }
0x1b49   :  { %v1269_v17 = vpack.c.bf16 %v1268_v16, %v1267_v14 }
0x1b4b   :  { %1271 = vrot.lane.b32.xlu1 %v1269_v17, %s2591_s24 }
0x1bbd   :  { %v2945_v38 = vpop.permute.xlu1 %1271 }
0x1bbe   :  { %2254 = vmatmul.mubr.msk.bf16.vlgmr.msra.gmra.mrb[20].mxu1 %vm221_vm3, %v2945_v38 }
0x1bbf   :  { %2266 = vmatpush3.bf16.msra.mxu1 %v2877_v59  ;;  %2269 = vmatprep.mubr.msk.bf16.mxu1 %vm2588_vm2, %v2587_v3 }
0x1bc0   :  { %2267 = vmatprep.subr.bf16.mxu1 %v2587_v3 }
0x1bc3   :  { %2268 = vmatpush3.bf16.msra.mxu1 %v2887_v62 }
0x1bc4   :  { %2281 = vmatprep.subr.bf16.mxu1 %v2587_v3 }
0x1c91   :  { %v1310_v18 = vpop.f32.mrb[20].mxu1 }
0x1c92   :  { %v1317_v19 = vadd.f32 %v1310_v18, %v2913_v60  ;;  %v2255_v42 = vpop.f32.mrb[21].mxu1 }
0x1c93   :  { %v1313_v20 = vpop.f32.mrb[22].mxu1 }
0x1c94   :  { %2491 = vtanh.f32 %v1317_v19  ;;  %v1318_v21 = vadd.f32 %v1313_v20, %v2916_v12  ;;  %v2256_v22 = vpop.f32.mrb[23].mxu1  ;;  %v2045_v24 = vmul.f32 -1.442695, %v1317_v19 }
0x1c96   :  { %2493 = vtanh.f32 %v1318_v21  ;;  %v2046_v25 = vmul.f32 -1.442695, %v1318_v21 }
0x1c97   :  { %2495 = vpow2.f32 %v2045_v24 }
0x1c98   :  { %2497 = vpow2.f32 %v2046_v25 }
0x1c9e   :  { %v2492_v23 = vpop.eup %2491 }
0x1c9f   :  { %1337 = vrot.lane.b32.xlu0 %v2492_v23, %s2590_s3 }
0x1ca0   :  { %v2494_v9 = vpop.eup %2493 }
0x1ca1   :  { %1339 = vrot.lane.b32.xlu1 %v2494_v9, %s2590_s3  ;;  %v2496_v15 = vpop.eup %2495 }
0x1ca2   :  { %v2498_v26 = vpop.eup %2497  ;;  %v1325_v27 = vadd.f32 1.0, %v2496_v15 }
0x1ca3   :  { %v1326_v46 = vadd.f32 1.0, %v2498_v26 }
0x1ca4   :  { %2499 = vrcp.f32 %v1325_v27 }
0x1ca5   :  { %2501 = vrcp.f32 %v1326_v46 }
0x1cae   :  { %v2500_v28 = vpop.eup %2499 }
0x1caf   :  { %v2502_v31 = vpop.eup %2501  ;;  %v1333_v36 = vmul.f32 %v2500_v28, %v1255_v5 }
0x1cb0   :  { %v1334_v37 = vmul.f32 %v2502_v31, %v1256_v7 }
0x1d11   :  { %v1338_v30 = vpop.permute.xlu0 %1337 }
0x1d12   :  { %v1343_v50 = vmul.f32 %v2500_v28, %v1338_v30 }
0x1d13   :  { %v1340_v33 = vpop.permute.xlu1 %1339 }
0x1d14   :  { %1347 = vrot.lane.b32.xlu0 %v1343_v50, %s2590_s3  ;;  %v1344_v34 = vmul.f32 %v2502_v31, %v1340_v33 }
0x1d16   :  { %1349 = vrot.lane.b32.xlu1 %v1344_v34, %s2590_s3 }
0x1d86   :  { %v1348_v54 = vpop.permute.xlu0 %1347 }
0x1d87   :  { %v1353_v40 = vadd.f32 %v1348_v54, %v1333_v36 }
0x1d88   :  { %v1350_v39 = vpop.permute.xlu1 %1349 }
0x1d89   :  { %2503 = vtanh.f32 %v1353_v40  ;;  %v1354_v44 = vadd.f32 %v1350_v39, %v1334_v37 }
0x1d8b   :  { %2505 = vtanh.f32 %v1354_v44 }
0x1d93   :  { %v2504_v41 = vpop.eup %2503 }
0x1d94   :  { %1359 = vrot.lane.b32.xlu0 %v2504_v41, %s2590_s3 }
0x1d95   :  { %v2506_v43 = vpop.eup %2505 }
0x1d96   :  { %1361 = vrot.lane.b32.xlu1 %v2506_v43, %s2590_s3 }
0x1e06   :  { %v1360_v45 = vpop.permute.xlu0 %1359 }
0x1e07   :  { %v1365_v49 = vmul.f32 %v2500_v28, %v1360_v45 }
0x1e08   :  { %v1362_v47 = vpop.permute.xlu1 %1361 }
0x1e09   :  { %v1366_v51 = vmul.f32 %v2502_v31, %v1362_v47 }
0x1e0b   :  { %v1367_v53 = vpack.c.bf16 %v1366_v51, %v1365_v49 }
0x1e0d   :  { %1369 = vrot.lane.b32.xlu0 %v1367_v53, %s2591_s24 }
0x1e7f   :  { %v2964_v55 = vpop.permute.xlu0 %1369 }
0x1e80   :  { %2262 = vmatmul.mubr.msk.bf16.vlgmr.msra.gmra.mrb[40].mxu0 %vm221_vm3, %v2964_v55 }
0x1e81   :  { %2274 = vmatpush3.bf16.msra.mxu0 %v2877_v59  ;;  %2277 = vmatprep.mubr.msk.bf16.mxu0 %vm2588_vm2, %v2587_v3 }
0x1e82   :  { %2275 = vmatprep.subr.bf16.mxu0 %v2587_v3 }
0x1e85   :  { %2276 = vmatpush3.bf16.msra.mxu0 %v2887_v62 }
0x1e86   :  { %2289 = vmatprep.subr.bf16.mxu0 %v2587_v3 }
0x1f53   :  { %v1408_v57 = vpop.f32.mrb[40].mxu0 }
0x1f54   :  { %v1415_v61 = vadd.f32 %v1408_v57, %v2913_v60  ;;  %v2263_v48 = vpop.f32.mrb[41].mxu0 }
0x1f55   :  { %v1411_v32 = vpop.f32.mrb[42].mxu0 }
0x1f56   :  { %2507 = vtanh.f32 %v1415_v61  ;;  %v1416_v63 = vadd.f32 %v1411_v32, %v2916_v12  ;;  %v2264_v52 = vpop.f32.mrb[43].mxu0  ;;  %v2048_v1 = vmul.f32 -1.442695, %v1415_v61 }
0x1f58   :  { %2509 = vtanh.f32 %v1416_v63  ;;  %v2049_v2 = vmul.f32 -1.442695, %v1416_v63 }
0x1f59   :  { %2511 = vpow2.f32 %v2048_v1 }
0x1f5a   :  { %2513 = vpow2.f32 %v2049_v2 }
0x1f60   :  { %v2508_v0 = vpop.eup %2507 }
0x1f61   :  { %1435 = vrot.lane.b32.xlu1 %v2508_v0, %s2590_s3 }
0x1f62   :  { %v2510_v35 = vpop.eup %2509 }
0x1f63   :  { %1437 = vrot.lane.b32.xlu0 %v2510_v35, %s2590_s3  ;;  %v2512_v29 = vpop.eup %2511 }
0x1f64   :  { %v2514_v4 = vpop.eup %2513  ;;  %v1423_v5 = vadd.f32 1.0, %v2512_v29 }
0x1f65   :  { %v1424_v56 = vadd.f32 1.0, %v2514_v4 }
0x1f66   :  { %2515 = vrcp.f32 %v1423_v5 }
0x1f67   :  { %2517 = vrcp.f32 %v1424_v56 }
0x1f70   :  { %v2516_v6 = vpop.eup %2515 }
0x1f71   :  { %v2518_v10 = vpop.eup %2517  ;;  %v1431_v14 = vmul.f32 %v2516_v6, %v1353_v40 }
0x1f72   :  { %v1432_v18 = vmul.f32 %v2518_v10, %v1354_v44 }
0x1fd3   :  { %v1436_v7 = vpop.permute.xlu1 %1435 }
0x1fd4   :  { %v1441_v8 = vmul.f32 %v2516_v6, %v1436_v7 }
0x1fd5   :  { %v1438_v11 = vpop.permute.xlu0 %1437 }
0x1fd6   :  { %1445 = vrot.lane.b32.xlu1 %v1441_v8, %s2590_s3  ;;  %v1442_v13 = vmul.f32 %v2518_v10, %v1438_v11 }
0x1fd8   :  { %1447 = vrot.lane.b32.xlu0 %v1442_v13, %s2590_s3 }
0x2048   :  { %v1446_v16 = vpop.permute.xlu1 %1445 }
0x2049   :  { %v1451_v17 = vadd.f32 %v1446_v16, %v1431_v14 }
0x204a   :  { %v1448_v19 = vpop.permute.xlu0 %1447 }
0x204b   :  { %2519 = vtanh.f32 %v1451_v17  ;;  %v1452_v42 = vadd.f32 %v1448_v19, %v1432_v18 }
0x204d   :  { %2521 = vtanh.f32 %v1452_v42 }
0x2055   :  { %v2520_v20 = vpop.eup %2519 }
0x2056   :  { %1457 = vrot.lane.b32.xlu1 %v2520_v20, %s2590_s3 }
0x2057   :  { %v2522_v21 = vpop.eup %2521 }
0x2058   :  { %1459 = vrot.lane.b32.xlu0 %v2522_v21, %s2590_s3 }
0x20c8   :  { %v1458_v22 = vpop.permute.xlu1 %1457 }
0x20c9   :  { %v1463_v9 = vmul.f32 %v2516_v6, %v1458_v22 }
0x20ca   :  { %v1460_v23 = vpop.permute.xlu0 %1459 }
0x20cb   :  { %v1464_v24 = vmul.f32 %v2518_v10, %v1460_v23 }
0x20cd   :  { %v1465_v25 = vpack.c.bf16 %v1464_v24, %v1463_v9 }
0x20cf   :  { %1467 = vrot.lane.b32.xlu1 %v1465_v25, %s2591_s24 }
0x2141   :  { %v2983_v15 = vpop.permute.xlu1 %1467 }
0x2142   :  { %2270 = vmatmul.mubr.msk.bf16.vlgmr.msra.gmra.mrb[24].mxu1 %vm221_vm3, %v2983_v15 }
0x2143   :  { %2282 = vmatpush3.bf16.msra.mxu1 %v2877_v59  ;;  %2285 = vmatprep.mubr.msk.bf16.mxu1 %vm2588_vm2, %v2587_v3 }
0x2144   :  { %2283 = vmatprep.subr.bf16.mxu1 %v2587_v3 }
0x2147   :  { %2284 = vmatpush3.bf16.msra.mxu1 %v2887_v62 }
0x2215   :  { %v1506_v26 = vpop.f32.mrb[24].mxu1 }
0x2216   :  { %v1513_v27 = vadd.f32 %v1506_v26, %v2913_v60  ;;  %v2271_v46 = vpop.f32.mrb[25].mxu1 }
0x2217   :  { %v1509_v28 = vpop.f32.mrb[26].mxu1 }
0x2218   :  { %2523 = vtanh.f32 %v1513_v27  ;;  %v1514_v30 = vadd.f32 %v1509_v28, %v2916_v12  ;;  %v2272_v50 = vpop.f32.mrb[27].mxu1  ;;  %v2051_v34 = vmul.f32 -1.442695, %v1513_v27 }
0x221a   :  { %2525 = vtanh.f32 %v1514_v30  ;;  %v2052_v36 = vmul.f32 -1.442695, %v1514_v30 }
0x221b   :  { %2527 = vpow2.f32 %v2051_v34 }
0x221c   :  { %2529 = vpow2.f32 %v2052_v36 }
0x2222   :  { %v2524_v31 = vpop.eup %2523 }
0x2223   :  { %1533 = vrot.lane.b32.xlu0 %v2524_v31, %s2590_s3 }
0x2224   :  { %v2526_v33 = vpop.eup %2525 }
0x2225   :  { %1535 = vrot.lane.b32.xlu1 %v2526_v33, %s2590_s3  ;;  %v2528_v54 = vpop.eup %2527 }
0x2226   :  { %v2530_v40 = vpop.eup %2529  ;;  %v1521_v37 = vadd.f32 1.0, %v2528_v54 }
0x2227   :  { %v1522_v39 = vadd.f32 1.0, %v2530_v40 }
0x2228   :  { %2531 = vrcp.f32 %v1521_v37 }
0x2229   :  { %2533 = vrcp.f32 %v1522_v39 }
0x2232   :  { %v2532_v44 = vpop.eup %2531 }
0x2233   :  { %v2534_v45 = vpop.eup %2533  ;;  %v1529_v51 = vmul.f32 %v2532_v44, %v1451_v17 }
0x2234   :  { %v1530_v61 = vmul.f32 %v2534_v45, %v1452_v42 }
0x2295   :  { %v1534_v41 = vpop.permute.xlu0 %1533 }
0x2296   :  { %v1539_v43 = vmul.f32 %v2532_v44, %v1534_v41 }
0x2297   :  { %v1536_v47 = vpop.permute.xlu1 %1535 }
0x2298   :  { %1543 = vrot.lane.b32.xlu0 %v1539_v43, %s2590_s3  ;;  %v1540_v49 = vmul.f32 %v2534_v45, %v1536_v47 }
0x229a   :  { %1545 = vrot.lane.b32.xlu1 %v1540_v49, %s2590_s3 }
0x230a   :  { %v1544_v53 = vpop.permute.xlu0 %1543 }
0x230b   :  { %v1549_v57 = vadd.f32 %v1544_v53, %v1529_v51 }
0x230c   :  { %v1546_v48 = vpop.permute.xlu1 %1545 }
0x230d   :  { %2535 = vtanh.f32 %v1549_v57  ;;  %v1550_v32 = vadd.f32 %v1546_v48, %v1530_v61 }
0x230f   :  { %2537 = vtanh.f32 %v1550_v32 }
0x2317   :  { %v2536_v63 = vpop.eup %2535 }
0x2318   :  { %1555 = vrot.lane.b32.xlu0 %v2536_v63, %s2590_s3 }
0x2319   :  { %v2538_v52 = vpop.eup %2537 }
0x231a   :  { %1557 = vrot.lane.b32.xlu1 %v2538_v52, %s2590_s3 }
0x238a   :  { %v1556_v0 = vpop.permute.xlu0 %1555 }
0x238b   :  { %v1561_v1 = vmul.f32 %v2532_v44, %v1556_v0 }
0x238c   :  { %v1558_v35 = vpop.permute.xlu1 %1557 }
0x238d   :  { %v1562_v2 = vmul.f32 %v2534_v45, %v1558_v35 }
0x238f   :  { %v1563_v29 = vpack.c.bf16 %v1562_v2, %v1561_v1 }
0x2391   :  { %1565 = vrot.lane.b32.xlu0 %v1563_v29, %s2591_s24 }
0x2403   :  { %v3001_v4 = vpop.permute.xlu0 %1565 }
0x2404   :  { %2278 = vmatmul.mubr.msk.bf16.vlgmr.msra.gmra.mrb[44].mxu0 %vm221_vm3, %v3001_v4 }
0x2405   :  { %2290 = vmatpush3.bf16.msra.mxu0 %v2877_v59  ;;  %2293 = vmatprep.mubr.msk.bf16.mxu0 %vm2588_vm2, %v2587_v3 }
0x2406   :  { %2291 = vmatprep.subr.bf16.mxu0 %v2587_v3 }
0x2409   :  { %2292 = vmatpush3.bf16.msra.mxu0 %v2887_v62 }
0x24d7   :  { %v1604_v5 = vpop.f32.mrb[44].mxu0 }
0x24d8   :  { %v1611_v56 = vadd.f32 %v1604_v5, %v2913_v60  ;;  %v2279_v6 = vpop.f32.mrb[45].mxu0 }
0x24d9   :  { %v1607_v7 = vpop.f32.mrb[46].mxu0 }
0x24da   :  { %2539 = vtanh.f32 %v1611_v56  ;;  %v1612_v8 = vadd.f32 %v1607_v7, %v2916_v12  ;;  %v2280_v10 = vpop.f32.mrb[47].mxu0  ;;  %v2054_v13 = vmul.f32 -1.442695, %v1611_v56 }
0x24dc   :  { %2541 = vtanh.f32 %v1612_v8  ;;  %v2055_v3 = vmul.f32 -1.442695, %v1612_v8 }
0x24dd   :  { %2543 = vpow2.f32 %v2054_v13 }
0x24de   :  { %2545 = vpow2.f32 %v2055_v3 }
0x24e4   :  { %v2540_v11 = vpop.eup %2539 }
0x24e5   :  { %1631 = vrot.lane.b32.xlu1 %v2540_v11, %s2590_s3 }
0x24e6   :  { %v2542_v59 = vpop.eup %2541 }
0x24e7   :  { %1633 = vrot.lane.b32.xlu0 %v2542_v59, %s2590_s3  ;;  %v2544_v62 = vpop.eup %2543 }
0x24e8   :  { %v2546_v14 = vpop.eup %2545  ;;  %v1619_v16 = vadd.f32 1.0, %v2544_v62 }
0x24e9   :  { %v1620_v17 = vadd.f32 1.0, %v2546_v14 }
0x24ea   :  { %2547 = vrcp.f32 %v1619_v16 }
0x24eb   :  { %2549 = vrcp.f32 %v1620_v17 }
0x24f4   :  { %v2548_v18 = vpop.eup %2547 }
0x24f5   :  { %v2550_v20 = vpop.eup %2549  ;;  %v1627_v23 = vmul.f32 %v2548_v18, %v1549_v57 }
0x24f6   :  { %v1628_v25 = vmul.f32 %v2550_v20, %v1550_v32 }
0x2557   :  { %v1632_v19 = vpop.permute.xlu1 %1631 }
0x2558   :  { %v1637_v42 = vmul.f32 %v2548_v18, %v1632_v19 }
0x2559   :  { %v1634_v21 = vpop.permute.xlu0 %1633 }
0x255a   :  { %1641 = vrot.lane.b32.xlu1 %v1637_v42, %s2590_s3  ;;  %v1638_v22 = vmul.f32 %v2550_v20, %v1634_v21 }
0x255c   :  { %1643 = vrot.lane.b32.xlu0 %v1638_v22, %s2590_s3 }
0x25cc   :  { %v1642_v9 = vpop.permute.xlu1 %1641 }
0x25cd   :  { %v1647_v24 = vadd.f32 %v1642_v9, %v1627_v23 }
0x25ce   :  { %v1644_v26 = vpop.permute.xlu0 %1643 }
0x25cf   :  { %2551 = vtanh.f32 %v1647_v24  ;;  %v1648_v27 = vadd.f32 %v1644_v26, %v1628_v25 }
0x25d1   :  { %2553 = vtanh.f32 %v1648_v27 }
0x25d9   :  { %v2552_v46 = vpop.eup %2551 }
0x25da   :  { %1653 = vrot.lane.b32.xlu1 %v2552_v46, %s2590_s3 }
0x25db   :  { %v2554_v28 = vpop.eup %2553 }
0x25dc   :  { %1655 = vrot.lane.b32.xlu0 %v2554_v28, %s2590_s3 }
0x264c   :  { %v1654_v30 = vpop.permute.xlu1 %1653 }
0x264d   :  { %v1659_v31 = vmul.f32 %v2548_v18, %v1654_v30 }
0x264e   :  { %v1656_v50 = vpop.permute.xlu0 %1655 }
0x264f   :  { %v1660_v33 = vmul.f32 %v2550_v20, %v1656_v50 }
0x2651   :  { %v1661_v34 = vpack.c.bf16 %v1660_v33, %v1659_v31 }
0x2653   :  { %1663 = vrot.lane.b32.xlu1 %v1661_v34, %s2591_s24 }
0x26c5   :  { %v3019_v36 = vpop.permute.xlu1 %1663 }
0x26c6   :  { %2286 = vmatmul.mubr.msk.bf16.vlgmr.msra.gmra.mrb[28].mxu1 %vm221_vm3, %v3019_v36 }
0x2799   :  { %v1702_v54 = vpop.f32.mrb[28].mxu1 }
0x279a   :  { %v1709_v40 = vadd.f32 %v1702_v54, %v2913_v60  ;;  %v2287_v37 = vpop.f32.mrb[29].mxu1 }
0x279b   :  { %v1705_v39 = vpop.f32.mrb[30].mxu1  ;;  %v2329_v37 = vld [vmem:[%s3136_s7] sm:$0xff]  }
0x279c   :  { %2555 = vtanh.f32 %v1709_v40  ;;  %v1710_v44 = vadd.f32 %v1705_v39, %v2916_v12  ;;  %v2288_v41 = vpop.f32.mrb[31].mxu1  ;;  %v2057_v47 = vmul.f32 -1.442695, %v1709_v40  ;;  %v2330_v39 = vld [vmem:[%s3136_s7 + $0x8] sm:$0xff]   ;;  %2297 = vmatprep.subr.bf16.mxu1 %v2329_v37 }
0x279d   :  { %2298 = vmatpush3.bf16.msra.mxu1 %v2329_v37 }
0x279e   :  { %2557 = vtanh.f32 %v1710_v44  ;;  %v2058_v49 = vmul.f32 -1.442695, %v1710_v44  ;;  %2299 = vmatprep.subr.bf16.mxu1 %v2330_v39 }
0x279f   :  { %2559 = vpow2.f32 %v2057_v47 }
0x27a0   :  { %2561 = vpow2.f32 %v2058_v49 }
0x27a1   :  { %2300 = vmatpush3.bf16.msra.mxu1 %v2330_v39 }
0x27a6   :  { %v2556_v43 = vpop.eup %2555 }
0x27a7   :  { %1729 = vrot.lane.b32.xlu0 %v2556_v43, %s2590_s3 }
0x27a8   :  { %v2558_v45 = vpop.eup %2557 }
0x27a9   :  { %1731 = vrot.lane.b32.xlu1 %v2558_v45, %s2590_s3  ;;  %v2560_v51 = vpop.eup %2559 }
0x27aa   :  { %v2562_v53 = vpop.eup %2561  ;;  %v1717_v57 = vadd.f32 1.0, %v2560_v51 }
0x27ab   :  { %v1718_v61 = vadd.f32 1.0, %v2562_v53 }
0x27ac   :  { %2563 = vrcp.f32 %v1717_v57  ;;  %v2062_v57 = vld [vmem:[%s3137_s8] ss:$0 sm:$0xff] }
0x27ad   :  { %2565 = vrcp.f32 %v1718_v61 }
0x27b6   :  { %v2564_v48 = vpop.eup %2563 }
0x27b7   :  { %v2566_v52 = vpop.eup %2565  ;;  %v1725_v1 = vmul.f32 %v2564_v48, %v1647_v24 }
0x27b8   :  { %v1726_v5 = vmul.f32 %v2566_v52, %v1648_v27 }
0x2819   :  { %v1730_v32 = vpop.permute.xlu0 %1729 }
0x281a   :  { %v1735_v63 = vmul.f32 %v2564_v48, %v1730_v32 }
0x281b   :  { %v1732_v0 = vpop.permute.xlu1 %1731 }
0x281c   :  { %1739 = vrot.lane.b32.xlu0 %v1735_v63, %s2590_s3  ;;  %v1736_v35 = vmul.f32 %v2566_v52, %v1732_v0 }
0x281e   :  { %1741 = vrot.lane.b32.xlu1 %v1736_v35, %s2590_s3 }
0x288e   :  { %v1740_v2 = vpop.permute.xlu0 %1739 }
0x288f   :  { %v1745_v29 = vadd.f32 %v1740_v2, %v1725_v1 }
0x2890   :  { %v1742_v56 = vpop.permute.xlu1 %1741 }
0x2891   :  { %2567 = vtanh.f32 %v1745_v29  ;;  %v1746_v6 = vadd.f32 %v1742_v56, %v1726_v5 }
0x2893   :  { %2569 = vtanh.f32 %v1746_v6 }
0x289b   :  { %v2568_v7 = vpop.eup %2567 }
0x289c   :  { %1751 = vrot.lane.b32.xlu0 %v2568_v7, %s2590_s3 }
0x289d   :  { %v2570_v8 = vpop.eup %2569 }
0x289e   :  { %1753 = vrot.lane.b32.xlu1 %v2570_v8, %s2590_s3 }
0x290e   :  { %v1752_v10 = vpop.permute.xlu0 %1751 }
0x290f   :  { %v1757_v59 = vmul.f32 %v2564_v48, %v1752_v10 }
0x2910   :  { %v1754_v11 = vpop.permute.xlu1 %1753 }
0x2911   :  { %v1758_v13 = vmul.f32 %v2566_v52, %v1754_v11 }
0x2913   :  { %v1759_v3 = vpack.c.bf16 %v1758_v13, %v1757_v59 }
0x2915   :  { %1761 = vrot.lane.b32.xlu0 %v1759_v3, %s2591_s24 }
0x2987   :  { %v1762_v62 = vpop.permute.xlu0 %1761 }
0x2988   :  { %2294 = vmatmul.mubr.msk.bf16.vlgmr.msra.gmra.mrb[48].mxu0 %vm221_vm3, %v1762_v62 }
0x2a5b   :  { %v1800_v14 = vpop.f32.mrb[48].mxu0 }
0x2a5c   :  { %v1807_v16 = vadd.f32 %v1800_v14, %v2913_v60  ;;  %v2295_v17 = vpop.f32.mrb[49].mxu0 }
0x2a5d   :  { %v1803_v18 = vpop.f32.mrb[50].mxu0 }
0x2a5e   :  { %2571 = vtanh.f32 %v1807_v16  ;;  %v1808_v19 = vadd.f32 %v1803_v18, %v2916_v12  ;;  %v2296_v42 = vpop.f32.mrb[51].mxu0  ;;  %v2060_v22 = vmul.f32 -1.442695, %v1807_v16 }
0x2a60   :  { %2573 = vtanh.f32 %v1808_v19  ;;  %v2061_v23 = vmul.f32 -1.442695, %v1808_v19 }
0x2a61   :  { %2575 = vpow2.f32 %v2060_v22 }
0x2a62   :  { %2577 = vpow2.f32 %v2061_v23 }
0x2a68   :  { %v2572_v20 = vpop.eup %2571 }
0x2a69   :  { %1827 = vrot.lane.b32.xlu1 %v2572_v20, %s2590_s3 }
0x2a6a   :  { %v2574_v21 = vpop.eup %2573 }
0x2a6b   :  { %1829 = vrot.lane.b32.xlu0 %v2574_v21, %s2590_s3  ;;  %v2576_v9 = vpop.eup %2575 }
0x2a6c   :  { %v2578_v24 = vpop.eup %2577  ;;  %v1815_v60 = vadd.f32 1.0, %v2576_v9 }
0x2a6d   :  { %v1816_v25 = vadd.f32 1.0, %v2578_v24 }
0x2a6e   :  { %2579 = vrcp.f32 %v1815_v60 }
0x2a6f   :  { %2581 = vrcp.f32 %v1816_v25 }
0x2a78   :  { %v2580_v26 = vpop.eup %2579 }
0x2a79   :  { %v2582_v46 = vpop.eup %2581  ;;  %v1823_v50 = vmul.f32 %v2580_v26, %v1745_v29 }
0x2a7a   :  { %v1824_v34 = vmul.f32 %v2582_v46, %v1746_v6 }
0x2adb   :  { %v1828_v12 = vpop.permute.xlu1 %1827 }
0x2adc   :  { %v1833_v27 = vmul.f32 %v2580_v26, %v1828_v12 }
0x2add   :  { %v1830_v28 = vpop.permute.xlu0 %1829 }
0x2ade   :  { %1837 = vrot.lane.b32.xlu1 %v1833_v27, %s2590_s3  ;;  %v1834_v30 = vmul.f32 %v2582_v46, %v1830_v28 }
0x2ae0   :  { %1839 = vrot.lane.b32.xlu0 %v1834_v30, %s2590_s3 }
0x2b50   :  { %v1838_v31 = vpop.permute.xlu1 %1837 }
0x2b51   :  { %v1843_v33 = vadd.f32 %v1838_v31, %v1823_v50 }
0x2b52   :  { %v1840_v54 = vpop.permute.xlu0 %1839 }
0x2b53   :  { %2583 = vtanh.f32 %v1843_v33  ;;  %v1844_v40 = vadd.f32 %v1840_v54, %v1824_v34 }
0x2b55   :  { %2585 = vtanh.f32 %v1844_v40 }
0x2b5d   :  { %v2584_v44 = vpop.eup %2583 }
0x2b5e   :  { %1849 = vrot.lane.b32.xlu1 %v2584_v44, %s2590_s3 }
0x2b5f   :  { %v2586_v41 = vpop.eup %2585 }
0x2b60   :  { %1851 = vrot.lane.b32.xlu0 %v2586_v41, %s2590_s3 }
0x2bd0   :  { %v1850_v43 = vpop.permute.xlu1 %1849 }
0x2bd1   :  { %v1855_v47 = vmul.f32 %v2580_v26, %v1850_v43 }
0x2bd2   :  { %v1852_v45 = vpop.permute.xlu0 %1851 }
0x2bd3   :  { %v1856_v49 = vmul.f32 %v2582_v46, %v1852_v45 }
0x2bd5   :  { %v1857_v51 = vpack.c.bf16 %v1856_v49, %v1855_v47 }
0x2bd7   :  { %1865 = vrot.lane.b32.xlu1 %v1857_v51, %s2591_s24 }
0x2c49   :  { %v1866_v53 = vpop.permute.xlu1 %1865 }
0x2c4a   :  { %2301 = vmatprep.mubr.msk.bf16.mxu1 %vm221_vm3, %v1866_v53 }
0x2c4b   :  { %2302 = vmatmul.mubr.msk.bf16.vlgmr.msra.gmra.mrb[32].mxu1 %vm221_vm3, %v1762_v62 }
0x2c4c   :  { %2305 = vmatprep.mubr.msk.bf16.mxu1 %vm221_vm3, %v3019_v36 }
0x2c53   :  { %2306 = vmatmul.mubr.msk.bf16.gmra.mrb[36].mxu1 %vm221_vm3, %v3001_v4 }
0x2c54   :  { %2309 = vmatprep.mubr.msk.bf16.mxu1 %vm221_vm3, %v2983_v15 }
0x2c5b   :  { %2310 = vmatmul.mubr.msk.bf16.gmra.mrb[40].mxu1 %vm221_vm3, %v2964_v55 }
0x2c5c   :  { %2313 = vmatprep.mubr.msk.bf16.mxu1 %vm221_vm3, %v2945_v38 }
0x2c63   :  { %2314 = vmatmul.mubr.msk.bf16.gmra.mrb[44].mxu1 %vm221_vm3, %v2926_v58 }
0x2d1e   :  { %v2303_v36 = vpop.f32.mrb[32].mxu1 }
0x2d1f   :  { %v1925_v61 = vadd.f32 %v2303_v36, %v2062_v57  ;;  %v1916_v48 = vpop.f32.mrb[33].mxu1 }
0x2d20   :  { %v1917_v4 = vadd.f32 %v2062_v57, %v1916_v48  ;;  %v2304_v32 = vpop.f32.mrb[34].mxu1 }
0x2d21   :  { %1981 = vst.msk [vmem:[%s3138_s9 + $0x10] sm:$0xff] %vm83_vm1, %v1925_v61  ;;  %v1928_v55 = vadd.f32 %v2304_v32, %v2062_v57  ;;  %v1919_v15 = vpop.f32.mrb[35].mxu1 }
0x2d22   :  { %1979 = vst.msk [vmem:[%s3138_s9] sm:$0xff] %vm83_vm1, %v1917_v4  ;;  %v1920_v58 = vadd.f32 %v2062_v57, %v1919_v15 }
0x2d23   :  { %1982 = vst.msk [vmem:[%s3138_s9 + $0x18] sm:$0xff] %vm83_vm1, %v1928_v55 }
0x2d24   :  { %1980 = vst.msk [vmem:[%s3138_s9 + $0x8] sm:$0xff] %vm83_vm1, %v1920_v58 }
0x2d26   :  { %v2307_v38 = vpop.f32.mrb[36].mxu1 }
0x2d27   :  { %v1941_v63 = vadd.f32 %v2307_v38, %v2062_v57  ;;  %v1932_v52 = vpop.f32.mrb[37].mxu1 }
0x2d28   :  { %v1933_v0 = vadd.f32 %v2062_v57, %v1932_v52  ;;  %v2308_v35 = vpop.f32.mrb[38].mxu1 }
0x2d29   :  { %1985 = vst.msk [vmem:[%s3138_s9 + $0x30] sm:$0xff] %vm83_vm1, %v1941_v63  ;;  %v1944_v1 = vadd.f32 %v2308_v35, %v2062_v57  ;;  %v1935_v2 = vpop.f32.mrb[39].mxu1 }
0x2d2a   :  { %1983 = vst.msk [vmem:[%s3138_s9 + $0x20] sm:$0xff] %vm83_vm1, %v1933_v0  ;;  %v1936_v29 = vadd.f32 %v2062_v57, %v1935_v2 }
0x2d2b   :  { %1986 = vst.msk [vmem:[%s3138_s9 + $0x38] sm:$0xff] %vm83_vm1, %v1944_v1 }
0x2d2c   :  { %1984 = vst.msk [vmem:[%s3138_s9 + $0x28] sm:$0xff] %vm83_vm1, %v1936_v29 }
0x2d2e   :  { %v2311_v5 = vpop.f32.mrb[40].mxu1 }
0x2d2f   :  { %v1957_v56 = vadd.f32 %v2311_v5, %v2062_v57  ;;  %v1948_v6 = vpop.f32.mrb[41].mxu1 }
0x2d30   :  { %v1949_v7 = vadd.f32 %v2062_v57, %v1948_v6  ;;  %v2312_v8 = vpop.f32.mrb[42].mxu1 }
0x2d31   :  { %1989 = vst.msk [vmem:[%s3138_s9 + $0x50] sm:$0xff] %vm83_vm1, %v1957_v56  ;;  %v1960_v10 = vadd.f32 %v2312_v8, %v2062_v57  ;;  %v1951_v11 = vpop.f32.mrb[43].mxu1 }
0x2d32   :  { %1987 = vst.msk [vmem:[%s3138_s9 + $0x40] sm:$0xff] %vm83_vm1, %v1949_v7  ;;  %v1952_v59 = vadd.f32 %v2062_v57, %v1951_v11 }
0x2d33   :  { %1990 = vst.msk [vmem:[%s3138_s9 + $0x58] sm:$0xff] %vm83_vm1, %v1960_v10 }
0x2d34   :  { %1988 = vst.msk [vmem:[%s3138_s9 + $0x48] sm:$0xff] %vm83_vm1, %v1952_v59 }
0x2d36   :  { %v2315_v13 = vpop.f32.mrb[44].mxu1 }
0x2d37   :  { %v1973_v3 = vadd.f32 %v2315_v13, %v2062_v57  ;;  %v1964_v62 = vpop.f32.mrb[45].mxu1 }
0x2d38   :  { %v1965_v14 = vadd.f32 %v2062_v57, %v1964_v62  ;;  %v2316_v16 = vpop.f32.mrb[46].mxu1 }
0x2d39   :  { %1993 = vst.msk [vmem:[%s3138_s9 + $0x70] sm:$0xff] %vm83_vm1, %v1973_v3  ;;  %v1976_v17 = vadd.f32 %v2316_v16, %v2062_v57  ;;  %v1967_v18 = vpop.f32.mrb[47].mxu1 }
0x2d3a   :  { %1991 = vst.msk [vmem:[%s3138_s9 + $0x60] sm:$0xff] %vm83_vm1, %v1965_v14  ;;  %v1968_v19 = vadd.f32 %v2062_v57, %v1967_v18 }
0x2d3b   :  { %1994 = vst.msk [vmem:[%s3138_s9 + $0x78] sm:$0xff] %vm83_vm1, %v1976_v17 }
0x2d3c   :  { %1992 = vst.msk [vmem:[%s3138_s9 + $0x68] sm:$0xff] %vm83_vm1, %v1968_v19 }

</bundles_post_ra>
